<compile_context>
chip_gen: v6e
topology: v6e:2x2x1
jax: 0.10.0
libtpu: 0.0.40
codegen_flags: <defaults>
</compile_context>

<pallas_src>
import jax
import jax.numpy as jnp
from jax.experimental import pallas as pl
from jax.experimental.pallas import tpu as pltpu

HIDDEN = 32   # hidden_size
EMBED = 32    # embed_size
TARGET = 64   # target_size (vocabulary)

PARAM_ORDER = ("emb_gi", "bgi", "whh", "bhn",
               "ww", "bw", "vbd", "eexp", "wlin_c", "wlin_h", "bl")


# ---------------------------------------------------------------------------
# Kernel: one grid step = R sublane-stacked lane-tiles (R*bt batch rows).
# ---------------------------------------------------------------------------
def word_decoder_kernel(words_ref, hx_ref, feats_ref, outs_ref, mask_ref,
                        emb_gi_ref, bgi_ref, whh_ref, bhn_ref,
                        ww_ref, bw_ref, vbd_ref, eexp_ref,
                        wlin_c_ref, wlin_h_ref, bl_ref,
                        out_ref):
    g = pl.program_id(0)
    R, bn = hx_ref.shape              # (R sublane-stacked tiles, b_tile*hidden = 128 lanes)
    t_k = feats_ref.shape[0]
    bt = mask_ref.shape[2]            # batch rows packed per lane-tile
    vocab = emb_gi_ref.shape[0] // bt

    # --- Fused embedding + GRU input matmul: one-hot (R, bt*V) @ precomputed (emb@W_ih^T) ---
    col = jax.lax.broadcasted_iota(jnp.int32, (R, bt * vocab), 1)
    row = jax.lax.broadcasted_iota(jnp.int32, (R, bt * vocab), 0)
    base = g * R * bt
    acc = None
    for r in range(R):                                # small static unroll (R*bt scalars)
        hit_r = None
        for j in range(bt):
            c = col == (words_ref[base + r * bt + j] + j * vocab)
            hit_r = c if hit_r is None else jnp.logical_or(hit_r, c)
        m = jnp.logical_and(row == r, hit_r)
        acc = m if acc is None else jnp.logical_or(acc, m)
    onehot = acc.astype(jnp.float32)                                        # (R, bt*V)

    # --- GRUCell (PyTorch gate order r, z, n); batch rows packed along lanes ---
    h = hx_ref[...]                                                         # (R, bn)
    # gi already contains b_ih (all gates) + b_hh (r/z gates), folded at param-prep time.
    gi = jnp.dot(onehot, emb_gi_ref[...], preferred_element_type=jnp.float32) + bgi_ref[...]
    gh = jnp.dot(h, whh_ref[...], preferred_element_type=jnp.float32)       # (R, 3*bn), no bias
    rz = jax.nn.sigmoid(gi[:, :2 * bn] + gh[:, :2 * bn])
    r_g = rz[:, :bn]
    z_g = rz[:, bn:]
    ng = jnp.tanh(gi[:, 2 * bn:] + r_g * (gh[:, 2 * bn:] + bhn_ref[...]))
    h_new = (1.0 - z_g) * ng + z_g * h                                      # (R, bn)

    # --- WordAttention, flat (t_k, R, bt*n) layout: full vregs per t_k-slab ---
    dec = jnp.dot(h_new, ww_ref[...], preferred_element_type=jnp.float32) + bw_ref[...]
    e = jnp.tanh(feats_ref[...] + dec[None, :, :])                          # (t_k, R, bn)
    # scores via MXU against block-diagonal v_w; v_w bias dropped (cancels in softmax)
    scores = jnp.dot(e.reshape(t_k * R, bn), vbd_ref[...],
                     preferred_element_type=jnp.float32).reshape(t_k, R, bt)
    m = jnp.max(scores, axis=0, keepdims=True)
    ex = jnp.exp(scores - m)
    inv = pl.reciprocal(jnp.sum(ex, axis=0, keepdims=True), approx=True)
    align = ex * inv * mask_ref[...]                                        # (t_k, R, bt)
    # expand align back to lanes with one small MXU matmul, then weighted sum over t_k
    align_f = jnp.dot(align.reshape(t_k * R, bt), eexp_ref[...],
                      preferred_element_type=jnp.float32).reshape(t_k, R, bn)
    content = jnp.sum(align_f * outs_ref[...], axis=0)                      # (R, bn)

    # --- final_dist = tanh(Linear(cat([content, h_new]))): concat-free, split weight ---
    out = jnp.tanh(jnp.dot(content, wlin_c_ref[...], preferred_element_type=jnp.float32)
                   + jnp.dot(h_new, wlin_h_ref[...], preferred_element_type=jnp.float32)
                   + bl_ref[...])
    out_ref[...] = out.astype(out_ref.dtype)                                # unmasked (R, 128)


# ---------------------------------------------------------------------------
# One-time parameter preparation (hoisted out of the decode loop).
# ---------------------------------------------------------------------------
def make_flat_params(p, b_tile):
    n = p["W_w_w"].shape[0]
    eye = jnp.eye(b_tile, dtype=jnp.float32)
    bd = lambda a: jnp.kron(eye, a.astype(jnp.float32))   # block-diag over the lane-tile

    def gate_blocks(w):    # (in, 3n) columns grouped [r|z|n] -> (bt*in, 3*bt*n)
        w = w.astype(jnp.float32)
        return jnp.concatenate([bd(w[:, k * n:(k + 1) * n]) for k in range(3)], axis=1)

    def gate_bias(b):      # (3n,) grouped [r|z|n] -> (1, 3*bt*n), tiled per packed batch row
        b = b.astype(jnp.float32)
        return jnp.concatenate(
            [jnp.tile(b[k * n:(k + 1) * n], b_tile) for k in range(3)]).reshape(1, -1)

    tile = lambda b: jnp.tile(b.astype(jnp.float32), b_tile).reshape(1, -1)

    # Fuse embedding into the GRU input matmul: per-token preactivations emb @ W_ih^T (V, 3n).
    emb_gi_tab = p["emb"].astype(jnp.float32) @ p["gru_w_ih"].astype(jnp.float32).T
    whh_t = p["gru_w_hh"].astype(jnp.float32).T            # (n, 3n)

    bih = p["gru_b_ih"].astype(jnp.float32)
    bhh = p["gru_b_hh"].astype(jnp.float32)
    # fold b_hh for the r/z gates into the input-path bias; keep b_hh_n separate (scaled by r)
    bgi = jnp.concatenate([bih[0:n] + bhh[0:n],
                           bih[n:2 * n] + bhh[n:2 * n],
                           bih[2 * n:3 * n]])

    lin_w = p["lin_w"].astype(jnp.float32)
    return dict(
        emb_gi=gate_blocks(emb_gi_tab),                      # (bt*V, 3*bt*n)
        bgi=gate_bias(bgi),                                  # (1, 3*bt*n)
        whh=gate_blocks(whh_t),                              # (bt*n, 3*bt*n)
        bhn=tile(bhh[2 * n:3 * n]),                          # (1, bt*n)
        ww=bd(p["W_w_w"].T), bw=tile(p["W_w_b"]),            # (bt*n, bt*n), (1, bt*n)
        vbd=bd(p["v_w_w"].reshape(n, 1)),                    # (bt*n, bt)
        eexp=bd(jnp.ones((1, n), jnp.float32)),              # (bt, bt*n)
        wlin_c=bd(lin_w[:, :n].T),                           # (bt*n, bt*n)  content half
        wlin_h=bd(lin_w[:, n:].T),                           # (bt*n, bt*n)  hidden half
        bl=tile(p["lin_b"]),                                 # (1, bt*n)
    )


# ---------------------------------------------------------------------------
# Wrapper: same signature/layout as the PyTorch module (time-major inputs).
# ---------------------------------------------------------------------------
def word_decoder_step(summary_words, w_hx, g_outputs, g_features, word_mask, fp,
                      tiles_per_step=8):
    t_k, B, n = g_outputs.shape
    bn = fp["ww"].shape[0]
    bt = bn // n                       # batch rows packed along lanes per tile
    R = tiles_per_step                 # lane-tiles stacked along sublanes per grid step
    rows_per_step = R * bt
    assert B % rows_per_step == 0, "batch must be a multiple of tiles_per_step * lane-tile"
    G = B // rows_per_step             # keep G a multiple of 2 on v7x for both TensorCores

    words = summary_words.astype(jnp.int32).reshape(-1)       # 1-D SMEM (no lane padding)
    hx = w_hx.astype(jnp.float32).reshape(G, R, bn)           # free, contiguous reshape

    # NOTE: feats/outs/mask layouts are step-invariant across decode steps; in a real decode
    # loop this transform is hoisted out and done once per source sequence.
    def to_flat(x):  # (t_k, B, n) -> (G, t_k, R, bt*n)
        return (x.astype(jnp.float32).reshape(t_k, G, R, bt, n)
                .transpose(1, 0, 2, 3, 4).reshape(G, t_k, R, bn))

    feats = to_flat(g_features)
    outs = to_flat(g_outputs)
    mask = (word_mask.astype(jnp.float32).reshape(t_k, G, R, bt)
            .transpose(1, 0, 2, 3))                           # (G, t_k, R, bt)

    params = [fp[k] for k in PARAM_ORDER]
    in_specs = (
        [pl.BlockSpec(memory_space=pltpu.MemorySpace.SMEM)] +            # token ids -> SMEM
        [pl.BlockSpec((None, R, bn), lambda g: (g, 0, 0)),               # w_hx (flat)
         pl.BlockSpec((None, t_k, R, bn), lambda g: (g, 0, 0, 0)),       # attn features (flat)
         pl.BlockSpec((None, t_k, R, bn), lambda g: (g, 0, 0, 0)),       # attn outputs (flat)
         pl.BlockSpec((None, t_k, R, bt), lambda g: (g, 0, 0, 0))] +     # word mask
        [pl.BlockSpec(prm.shape, lambda g: (0, 0)) for prm in params]    # grid-invariant weights
    )

    out = pl.pallas_call(
        word_decoder_kernel,
        grid=(G,),
        in_specs=in_specs,
        out_specs=pl.BlockSpec((None, R, bn), lambda g: (g, 0, 0)),
        out_shape=jax.ShapeDtypeStruct((G, R, bn), jnp.float32),
        compiler_params=pltpu.CompilerParams(
            dimension_semantics=("parallel",)),                          # v7x: use both TCs
    )(words, hx, feats, outs, mask, *params)
    return out.reshape(B, n)


# ---------------------------------------------------------------------------
# Deterministic PyTorch-style init + pure-JAX reference.
# ---------------------------------------------------------------------------
def _uniform(key, shape, bound):
    return jax.random.uniform(key, shape, jnp.float32, -bound, bound)


def init_params(key):
    n, E, V = HIDDEN, EMBED, TARGET
    ks = jax.random.split(key, 11)
    b_gru = 1.0 / (n ** 0.5)
    emb = jax.random.normal(ks[0], (V, E), jnp.float32).at[0].set(0.0)   # padding_idx=0
    return dict(
        emb=emb,
        gru_w_ih=_uniform(ks[1], (3 * n, E), b_gru),
        gru_w_hh=_uniform(ks[2], (3 * n, n), b_gru),
        gru_b_ih=_uniform(ks[3], (3 * n,), b_gru),
        gru_b_hh=_uniform(ks[4], (3 * n,), b_gru),
        W_w_w=_uniform(ks[5], (n, n), 1.0 / n ** 0.5),
        W_w_b=_uniform(ks[6], (n,), 1.0 / n ** 0.5),
        v_w_w=_uniform(ks[7], (1, n), 1.0 / n ** 0.5),
        v_w_b=_uniform(ks[8], (1,), 1.0 / n ** 0.5),
        lin_w=_uniform(ks[9], (n, 2 * n), 1.0 / (2 * n) ** 0.5),
        lin_b=_uniform(ks[10], (n,), 1.0 / (2 * n) ** 0.5),
    )


def _reference_forward(summary_words, w_hx, g_outputs, g_features, word_mask, p):
    # Mirrors the PyTorch WordDecoder.forward exactly (including v_w's bias).
    embed = p["emb"][summary_words]                              # nn.Embedding lookup
    gi = embed @ p["gru_w_ih"].T + p["gru_b_ih"]
    gh = w_hx @ p["gru_w_hh"].T + p["gru_b_hh"]
    i_r, i_z, i_n = jnp.split(gi, 3, axis=1)
    h_r, h_z, h_n = jnp.split(gh, 3, axis=1)
    r = jax.nn.sigmoid(i_r + h_r)
    z = jax.nn.sigmoid(i_z + h_z)
    ng = jnp.tanh(i_n + r * h_n)
    hx = (1.0 - z) * ng + z * w_hx                               # GRUCell output
    dec = hx @ p["W_w_w"].T + p["W_w_b"]
    e = jnp.tanh(g_features + dec[None])
    scores = e @ p["v_w_w"].T + p["v_w_b"]                       # (t_k, B, 1)
    align = jax.nn.softmax(scores, axis=0) * word_mask
    content = (align * g_outputs).sum(0)
    concat = jnp.concatenate([content, hx], axis=1)
    return jnp.tanh(concat @ p["lin_w"].T + p["lin_b"])


if __name__ == "__main__":
    # 64 batch rows = 16 lane-tiles of 4 rows = 2 fat "parallel" grid steps of (8, 128) slabs.
    t_k, B, n = 8, 64, HIDDEN

    key = jax.random.PRNGKey(0)
    ks = jax.random.split(key, 7)
    params = init_params(ks[0])

    summary_words = jax.random.randint(ks[1], (B,), 0, TARGET).at[0].set(0)  # hit padding_idx
    w_hx = jax.random.normal(ks[2], (B, n), jnp.float32)
    g_outputs = jax.random.normal(ks[3], (t_k, B, n), jnp.float32)
    g_features = jax.random.normal(ks[4], (t_k, B, n), jnp.float32)
    word_mask = (jax.random.uniform(ks[5], (t_k, B, 1)) < 0.8).astype(jnp.float32)

    flat_params = make_flat_params(params, b_tile=128 // n)      # precomputed once

    out = word_decoder_step(summary_words, w_hx, g_outputs, g_features, word_mask,
                            flat_params, tiles_per_step=8)
    out = jax.block_until_ready(out)

    ref = _reference_forward(summary_words, w_hx, g_outputs, g_features, word_mask, params)
    assert out.shape == (B, n)
    # approx reciprocal in the softmax introduces ~1e-4-level relative error
    err = float(jnp.max(jnp.abs(out - ref)))
    assert jnp.allclose(out, ref, atol=2e-3, rtol=2e-3), f"mismatch vs reference, max err {err}"
    print("KERNEL_OK")
</pallas_src>

<mosaic_0001>
module attributes {stable_mosaic.version = 11 : i64} {
  func.func @word_decoder_kernel(%arg0: i32, %arg1: memref<64xi32, #tpu.memory_space<smem>>, %arg2: memref<1x8x128xf32, #tpu.memory_space<vmem>>, %arg3: memref<1x8x8x128xf32, #tpu.memory_space<vmem>>, %arg4: memref<1x8x8x128xf32, #tpu.memory_space<vmem>>, %arg5: memref<1x8x8x4xf32, #tpu.memory_space<vmem>>, %arg6: memref<256x384xf32, #tpu.memory_space<vmem>>, %arg7: memref<1x384xf32, #tpu.memory_space<vmem>>, %arg8: memref<128x384xf32, #tpu.memory_space<vmem>>, %arg9: memref<1x128xf32, #tpu.memory_space<vmem>>, %arg10: memref<128x128xf32, #tpu.memory_space<vmem>>, %arg11: memref<1x128xf32, #tpu.memory_space<vmem>>, %arg12: memref<128x4xf32, #tpu.memory_space<vmem>>, %arg13: memref<4x128xf32, #tpu.memory_space<vmem>>, %arg14: memref<128x128xf32, #tpu.memory_space<vmem>>, %arg15: memref<128x128xf32, #tpu.memory_space<vmem>>, %arg16: memref<1x128xf32, #tpu.memory_space<vmem>>, %arg17: memref<1x8x128xf32, #tpu.memory_space<vmem>>) attributes {dimension_semantics = [#tpu.dimension_semantics<parallel>], iteration_bounds = array<i64: 2>, scalar_prefetch = 0 : i64, scratch_operands = 0 : i64, tpu.core_type = #tpu.core_type<tc>, window_params = [{transform_indices = @transform_0, window_bounds = array<i64: 64>}, {transform_indices = @transform_1, window_bounds = array<i64: 1, 8, 128>}, {transform_indices = @transform_2, window_bounds = array<i64: 1, 8, 8, 128>}, {transform_indices = @transform_3, window_bounds = array<i64: 1, 8, 8, 128>}, {transform_indices = @transform_4, window_bounds = array<i64: 1, 8, 8, 4>}, {pipeline_mode = #tpu.pipeline_mode<synchronous>, transform_indices = @transform_5, window_bounds = array<i64: 256, 384>}, {pipeline_mode = #tpu.pipeline_mode<synchronous>, transform_indices = @transform_6, window_bounds = array<i64: 1, 384>}, {pipeline_mode = #tpu.pipeline_mode<synchronous>, transform_indices = @transform_7, window_bounds = array<i64: 128, 384>}, {pipeline_mode = #tpu.pipeline_mode<synchronous>, transform_indices = @transform_8, window_bounds = array<i64: 1, 128>}, {pipeline_mode = #tpu.pipeline_mode<synchronous>, transform_indices = @transform_9, window_bounds = array<i64: 128, 128>}, {pipeline_mode = #tpu.pipeline_mode<synchronous>, transform_indices = @transform_10, window_bounds = array<i64: 1, 128>}, {pipeline_mode = #tpu.pipeline_mode<synchronous>, transform_indices = @transform_11, window_bounds = array<i64: 128, 4>}, {pipeline_mode = #tpu.pipeline_mode<synchronous>, transform_indices = @transform_12, window_bounds = array<i64: 4, 128>}, {pipeline_mode = #tpu.pipeline_mode<synchronous>, transform_indices = @transform_13, window_bounds = array<i64: 128, 128>}, {pipeline_mode = #tpu.pipeline_mode<synchronous>, transform_indices = @transform_14, window_bounds = array<i64: 128, 128>}, {pipeline_mode = #tpu.pipeline_mode<synchronous>, transform_indices = @transform_15, window_bounds = array<i64: 1, 128>}, {transform_indices = @transform_16, window_bounds = array<i64: 1, 8, 128>}]} {
    %0 = tpu.iota {dimensions = array<i32: 1>} : vector<8x256xi32>
    %1 = tpu.iota {dimensions = array<i32: 0>} : vector<8x256xi32>
    %c8_i32 = arith.constant 8 : i32
    %2 = arith.muli %arg0, %c8_i32 : i32
    %c4_i32 = arith.constant 4 : i32
    %3 = arith.muli %2, %c4_i32 : i32
    %c0_i32 = arith.constant 0 : i32
    %4 = arith.addi %3, %c0_i32 : i32
    %c0_i32_0 = arith.constant 0 : i32
    %5 = arith.addi %4, %c0_i32_0 : i32
    %6 = arith.index_cast %5 : i32 to index
    %7 = memref.load %arg1[%6] : memref<64xi32, #tpu.memory_space<smem>>
    %c0_i32_1 = arith.constant 0 : i32
    %8 = arith.addi %7, %c0_i32_1 : i32
    %9 = vector.broadcast %8 : i32 to vector<8x256xi32>
    %10 = arith.cmpi eq, %0, %9 : vector<8x256xi32>
    %c0_i32_2 = arith.constant 0 : i32
    %11 = arith.addi %3, %c0_i32_2 : i32
    %c1_i32 = arith.constant 1 : i32
    %12 = arith.addi %11, %c1_i32 : i32
    %13 = arith.index_cast %12 : i32 to index
    %14 = memref.load %arg1[%13] : memref<64xi32, #tpu.memory_space<smem>>
    %c64_i32 = arith.constant 64 : i32
    %15 = arith.addi %14, %c64_i32 : i32
    %16 = vector.broadcast %15 : i32 to vector<8x256xi32>
    %17 = arith.cmpi eq, %0, %16 : vector<8x256xi32>
    %18 = arith.ori %10, %17 : vector<8x256xi1>
    %c0_i32_3 = arith.constant 0 : i32
    %19 = arith.addi %3, %c0_i32_3 : i32
    %c2_i32 = arith.constant 2 : i32
    %20 = arith.addi %19, %c2_i32 : i32
    %21 = arith.index_cast %20 : i32 to index
    %22 = memref.load %arg1[%21] : memref<64xi32, #tpu.memory_space<smem>>
    %c128_i32 = arith.constant 128 : i32
    %23 = arith.addi %22, %c128_i32 : i32
    %24 = vector.broadcast %23 : i32 to vector<8x256xi32>
    %25 = arith.cmpi eq, %0, %24 : vector<8x256xi32>
    %26 = arith.ori %18, %25 : vector<8x256xi1>
    %c0_i32_4 = arith.constant 0 : i32
    %27 = arith.addi %3, %c0_i32_4 : i32
    %c3_i32 = arith.constant 3 : i32
    %28 = arith.addi %27, %c3_i32 : i32
    %29 = arith.index_cast %28 : i32 to index
    %30 = memref.load %arg1[%29] : memref<64xi32, #tpu.memory_space<smem>>
    %c192_i32 = arith.constant 192 : i32
    %31 = arith.addi %30, %c192_i32 : i32
    %32 = vector.broadcast %31 : i32 to vector<8x256xi32>
    %33 = arith.cmpi eq, %0, %32 : vector<8x256xi32>
    %34 = arith.ori %26, %33 : vector<8x256xi1>
    %c0_i32_5 = arith.constant 0 : i32
    %35 = vector.broadcast %c0_i32_5 : i32 to vector<8x256xi32>
    %36 = arith.cmpi eq, %1, %35 : vector<8x256xi32>
    %37 = arith.andi %36, %34 : vector<8x256xi1>
    %c4_i32_6 = arith.constant 4 : i32
    %38 = arith.addi %3, %c4_i32_6 : i32
    %c0_i32_7 = arith.constant 0 : i32
    %39 = arith.addi %38, %c0_i32_7 : i32
    %40 = arith.index_cast %39 : i32 to index
    %41 = memref.load %arg1[%40] : memref<64xi32, #tpu.memory_space<smem>>
    %c0_i32_8 = arith.constant 0 : i32
    %42 = arith.addi %41, %c0_i32_8 : i32
    %43 = vector.broadcast %42 : i32 to vector<8x256xi32>
    %44 = arith.cmpi eq, %0, %43 : vector<8x256xi32>
    %c4_i32_9 = arith.constant 4 : i32
    %45 = arith.addi %3, %c4_i32_9 : i32
    %c1_i32_10 = arith.constant 1 : i32
    %46 = arith.addi %45, %c1_i32_10 : i32
    %47 = arith.index_cast %46 : i32 to index
    %48 = memref.load %arg1[%47] : memref<64xi32, #tpu.memory_space<smem>>
    %c64_i32_11 = arith.constant 64 : i32
    %49 = arith.addi %48, %c64_i32_11 : i32
    %50 = vector.broadcast %49 : i32 to vector<8x256xi32>
    %51 = arith.cmpi eq, %0, %50 : vector<8x256xi32>
    %52 = arith.ori %44, %51 : vector<8x256xi1>
    %c4_i32_12 = arith.constant 4 : i32
    %53 = arith.addi %3, %c4_i32_12 : i32
    %c2_i32_13 = arith.constant 2 : i32
    %54 = arith.addi %53, %c2_i32_13 : i32
    %55 = arith.index_cast %54 : i32 to index
    %56 = memref.load %arg1[%55] : memref<64xi32, #tpu.memory_space<smem>>
    %c128_i32_14 = arith.constant 128 : i32
    %57 = arith.addi %56, %c128_i32_14 : i32
    %58 = vector.broadcast %57 : i32 to vector<8x256xi32>
    %59 = arith.cmpi eq, %0, %58 : vector<8x256xi32>
    %60 = arith.ori %52, %59 : vector<8x256xi1>
    %c4_i32_15 = arith.constant 4 : i32
    %61 = arith.addi %3, %c4_i32_15 : i32
    %c3_i32_16 = arith.constant 3 : i32
    %62 = arith.addi %61, %c3_i32_16 : i32
    %63 = arith.index_cast %62 : i32 to index
    %64 = memref.load %arg1[%63] : memref<64xi32, #tpu.memory_space<smem>>
    %c192_i32_17 = arith.constant 192 : i32
    %65 = arith.addi %64, %c192_i32_17 : i32
    %66 = vector.broadcast %65 : i32 to vector<8x256xi32>
    %67 = arith.cmpi eq, %0, %66 : vector<8x256xi32>
    %68 = arith.ori %60, %67 : vector<8x256xi1>
    %c1_i32_18 = arith.constant 1 : i32
    %69 = vector.broadcast %c1_i32_18 : i32 to vector<8x256xi32>
    %70 = arith.cmpi eq, %1, %69 : vector<8x256xi32>
    %71 = arith.andi %70, %68 : vector<8x256xi1>
    %72 = arith.ori %37, %71 : vector<8x256xi1>
    %c8_i32_19 = arith.constant 8 : i32
    %73 = arith.addi %3, %c8_i32_19 : i32
    %c0_i32_20 = arith.constant 0 : i32
    %74 = arith.addi %73, %c0_i32_20 : i32
    %75 = arith.index_cast %74 : i32 to index
    %76 = memref.load %arg1[%75] : memref<64xi32, #tpu.memory_space<smem>>
    %c0_i32_21 = arith.constant 0 : i32
    %77 = arith.addi %76, %c0_i32_21 : i32
    %78 = vector.broadcast %77 : i32 to vector<8x256xi32>
    %79 = arith.cmpi eq, %0, %78 : vector<8x256xi32>
    %c8_i32_22 = arith.constant 8 : i32
    %80 = arith.addi %3, %c8_i32_22 : i32
    %c1_i32_23 = arith.constant 1 : i32
    %81 = arith.addi %80, %c1_i32_23 : i32
    %82 = arith.index_cast %81 : i32 to index
    %83 = memref.load %arg1[%82] : memref<64xi32, #tpu.memory_space<smem>>
    %c64_i32_24 = arith.constant 64 : i32
    %84 = arith.addi %83, %c64_i32_24 : i32
    %85 = vector.broadcast %84 : i32 to vector<8x256xi32>
    %86 = arith.cmpi eq, %0, %85 : vector<8x256xi32>
    %87 = arith.ori %79, %86 : vector<8x256xi1>
    %c8_i32_25 = arith.constant 8 : i32
    %88 = arith.addi %3, %c8_i32_25 : i32
    %c2_i32_26 = arith.constant 2 : i32
    %89 = arith.addi %88, %c2_i32_26 : i32
    %90 = arith.index_cast %89 : i32 to index
    %91 = memref.load %arg1[%90] : memref<64xi32, #tpu.memory_space<smem>>
    %c128_i32_27 = arith.constant 128 : i32
    %92 = arith.addi %91, %c128_i32_27 : i32
    %93 = vector.broadcast %92 : i32 to vector<8x256xi32>
    %94 = arith.cmpi eq, %0, %93 : vector<8x256xi32>
    %95 = arith.ori %87, %94 : vector<8x256xi1>
    %c8_i32_28 = arith.constant 8 : i32
    %96 = arith.addi %3, %c8_i32_28 : i32
    %c3_i32_29 = arith.constant 3 : i32
    %97 = arith.addi %96, %c3_i32_29 : i32
    %98 = arith.index_cast %97 : i32 to index
    %99 = memref.load %arg1[%98] : memref<64xi32, #tpu.memory_space<smem>>
    %c192_i32_30 = arith.constant 192 : i32
    %100 = arith.addi %99, %c192_i32_30 : i32
    %101 = vector.broadcast %100 : i32 to vector<8x256xi32>
    %102 = arith.cmpi eq, %0, %101 : vector<8x256xi32>
    %103 = arith.ori %95, %102 : vector<8x256xi1>
    %c2_i32_31 = arith.constant 2 : i32
    %104 = vector.broadcast %c2_i32_31 : i32 to vector<8x256xi32>
    %105 = arith.cmpi eq, %1, %104 : vector<8x256xi32>
    %106 = arith.andi %105, %103 : vector<8x256xi1>
    %107 = arith.ori %72, %106 : vector<8x256xi1>
    %c12_i32 = arith.constant 12 : i32
    %108 = arith.addi %3, %c12_i32 : i32
    %c0_i32_32 = arith.constant 0 : i32
    %109 = arith.addi %108, %c0_i32_32 : i32
    %110 = arith.index_cast %109 : i32 to index
    %111 = memref.load %arg1[%110] : memref<64xi32, #tpu.memory_space<smem>>
    %c0_i32_33 = arith.constant 0 : i32
    %112 = arith.addi %111, %c0_i32_33 : i32
    %113 = vector.broadcast %112 : i32 to vector<8x256xi32>
    %114 = arith.cmpi eq, %0, %113 : vector<8x256xi32>
    %c12_i32_34 = arith.constant 12 : i32
    %115 = arith.addi %3, %c12_i32_34 : i32
    %c1_i32_35 = arith.constant 1 : i32
    %116 = arith.addi %115, %c1_i32_35 : i32
    %117 = arith.index_cast %116 : i32 to index
    %118 = memref.load %arg1[%117] : memref<64xi32, #tpu.memory_space<smem>>
    %c64_i32_36 = arith.constant 64 : i32
    %119 = arith.addi %118, %c64_i32_36 : i32
    %120 = vector.broadcast %119 : i32 to vector<8x256xi32>
    %121 = arith.cmpi eq, %0, %120 : vector<8x256xi32>
    %122 = arith.ori %114, %121 : vector<8x256xi1>
    %c12_i32_37 = arith.constant 12 : i32
    %123 = arith.addi %3, %c12_i32_37 : i32
    %c2_i32_38 = arith.constant 2 : i32
    %124 = arith.addi %123, %c2_i32_38 : i32
    %125 = arith.index_cast %124 : i32 to index
    %126 = memref.load %arg1[%125] : memref<64xi32, #tpu.memory_space<smem>>
    %c128_i32_39 = arith.constant 128 : i32
    %127 = arith.addi %126, %c128_i32_39 : i32
    %128 = vector.broadcast %127 : i32 to vector<8x256xi32>
    %129 = arith.cmpi eq, %0, %128 : vector<8x256xi32>
    %130 = arith.ori %122, %129 : vector<8x256xi1>
    %c12_i32_40 = arith.constant 12 : i32
    %131 = arith.addi %3, %c12_i32_40 : i32
    %c3_i32_41 = arith.constant 3 : i32
    %132 = arith.addi %131, %c3_i32_41 : i32
    %133 = arith.index_cast %132 : i32 to index
    %134 = memref.load %arg1[%133] : memref<64xi32, #tpu.memory_space<smem>>
    %c192_i32_42 = arith.constant 192 : i32
    %135 = arith.addi %134, %c192_i32_42 : i32
    %136 = vector.broadcast %135 : i32 to vector<8x256xi32>
    %137 = arith.cmpi eq, %0, %136 : vector<8x256xi32>
    %138 = arith.ori %130, %137 : vector<8x256xi1>
    %c3_i32_43 = arith.constant 3 : i32
    %139 = vector.broadcast %c3_i32_43 : i32 to vector<8x256xi32>
    %140 = arith.cmpi eq, %1, %139 : vector<8x256xi32>
    %141 = arith.andi %140, %138 : vector<8x256xi1>
    %142 = arith.ori %107, %141 : vector<8x256xi1>
    %c16_i32 = arith.constant 16 : i32
    %143 = arith.addi %3, %c16_i32 : i32
    %c0_i32_44 = arith.constant 0 : i32
    %144 = arith.addi %143, %c0_i32_44 : i32
    %145 = arith.index_cast %144 : i32 to index
    %146 = memref.load %arg1[%145] : memref<64xi32, #tpu.memory_space<smem>>
    %c0_i32_45 = arith.constant 0 : i32
    %147 = arith.addi %146, %c0_i32_45 : i32
    %148 = vector.broadcast %147 : i32 to vector<8x256xi32>
    %149 = arith.cmpi eq, %0, %148 : vector<8x256xi32>
    %c16_i32_46 = arith.constant 16 : i32
    %150 = arith.addi %3, %c16_i32_46 : i32
    %c1_i32_47 = arith.constant 1 : i32
    %151 = arith.addi %150, %c1_i32_47 : i32
    %152 = arith.index_cast %151 : i32 to index
    %153 = memref.load %arg1[%152] : memref<64xi32, #tpu.memory_space<smem>>
    %c64_i32_48 = arith.constant 64 : i32
    %154 = arith.addi %153, %c64_i32_48 : i32
    %155 = vector.broadcast %154 : i32 to vector<8x256xi32>
    %156 = arith.cmpi eq, %0, %155 : vector<8x256xi32>
    %157 = arith.ori %149, %156 : vector<8x256xi1>
    %c16_i32_49 = arith.constant 16 : i32
    %158 = arith.addi %3, %c16_i32_49 : i32
    %c2_i32_50 = arith.constant 2 : i32
    %159 = arith.addi %158, %c2_i32_50 : i32
    %160 = arith.index_cast %159 : i32 to index
    %161 = memref.load %arg1[%160] : memref<64xi32, #tpu.memory_space<smem>>
    %c128_i32_51 = arith.constant 128 : i32
    %162 = arith.addi %161, %c128_i32_51 : i32
    %163 = vector.broadcast %162 : i32 to vector<8x256xi32>
    %164 = arith.cmpi eq, %0, %163 : vector<8x256xi32>
    %165 = arith.ori %157, %164 : vector<8x256xi1>
    %c16_i32_52 = arith.constant 16 : i32
    %166 = arith.addi %3, %c16_i32_52 : i32
    %c3_i32_53 = arith.constant 3 : i32
    %167 = arith.addi %166, %c3_i32_53 : i32
    %168 = arith.index_cast %167 : i32 to index
    %169 = memref.load %arg1[%168] : memref<64xi32, #tpu.memory_space<smem>>
    %c192_i32_54 = arith.constant 192 : i32
    %170 = arith.addi %169, %c192_i32_54 : i32
    %171 = vector.broadcast %170 : i32 to vector<8x256xi32>
    %172 = arith.cmpi eq, %0, %171 : vector<8x256xi32>
    %173 = arith.ori %165, %172 : vector<8x256xi1>
    %c4_i32_55 = arith.constant 4 : i32
    %174 = vector.broadcast %c4_i32_55 : i32 to vector<8x256xi32>
    %175 = arith.cmpi eq, %1, %174 : vector<8x256xi32>
    %176 = arith.andi %175, %173 : vector<8x256xi1>
    %177 = arith.ori %142, %176 : vector<8x256xi1>
    %c20_i32 = arith.constant 20 : i32
    %178 = arith.addi %3, %c20_i32 : i32
    %c0_i32_56 = arith.constant 0 : i32
    %179 = arith.addi %178, %c0_i32_56 : i32
    %180 = arith.index_cast %179 : i32 to index
    %181 = memref.load %arg1[%180] : memref<64xi32, #tpu.memory_space<smem>>
    %c0_i32_57 = arith.constant 0 : i32
    %182 = arith.addi %181, %c0_i32_57 : i32
    %183 = vector.broadcast %182 : i32 to vector<8x256xi32>
    %184 = arith.cmpi eq, %0, %183 : vector<8x256xi32>
    %c20_i32_58 = arith.constant 20 : i32
    %185 = arith.addi %3, %c20_i32_58 : i32
    %c1_i32_59 = arith.constant 1 : i32
    %186 = arith.addi %185, %c1_i32_59 : i32
    %187 = arith.index_cast %186 : i32 to index
    %188 = memref.load %arg1[%187] : memref<64xi32, #tpu.memory_space<smem>>
    %c64_i32_60 = arith.constant 64 : i32
    %189 = arith.addi %188, %c64_i32_60 : i32
    %190 = vector.broadcast %189 : i32 to vector<8x256xi32>
    %191 = arith.cmpi eq, %0, %190 : vector<8x256xi32>
    %192 = arith.ori %184, %191 : vector<8x256xi1>
    %c20_i32_61 = arith.constant 20 : i32
    %193 = arith.addi %3, %c20_i32_61 : i32
    %c2_i32_62 = arith.constant 2 : i32
    %194 = arith.addi %193, %c2_i32_62 : i32
    %195 = arith.index_cast %194 : i32 to index
    %196 = memref.load %arg1[%195] : memref<64xi32, #tpu.memory_space<smem>>
    %c128_i32_63 = arith.constant 128 : i32
    %197 = arith.addi %196, %c128_i32_63 : i32
    %198 = vector.broadcast %197 : i32 to vector<8x256xi32>
    %199 = arith.cmpi eq, %0, %198 : vector<8x256xi32>
    %200 = arith.ori %192, %199 : vector<8x256xi1>
    %c20_i32_64 = arith.constant 20 : i32
    %201 = arith.addi %3, %c20_i32_64 : i32
    %c3_i32_65 = arith.constant 3 : i32
    %202 = arith.addi %201, %c3_i32_65 : i32
    %203 = arith.index_cast %202 : i32 to index
    %204 = memref.load %arg1[%203] : memref<64xi32, #tpu.memory_space<smem>>
    %c192_i32_66 = arith.constant 192 : i32
    %205 = arith.addi %204, %c192_i32_66 : i32
    %206 = vector.broadcast %205 : i32 to vector<8x256xi32>
    %207 = arith.cmpi eq, %0, %206 : vector<8x256xi32>
    %208 = arith.ori %200, %207 : vector<8x256xi1>
    %c5_i32 = arith.constant 5 : i32
    %209 = vector.broadcast %c5_i32 : i32 to vector<8x256xi32>
    %210 = arith.cmpi eq, %1, %209 : vector<8x256xi32>
    %211 = arith.andi %210, %208 : vector<8x256xi1>
    %212 = arith.ori %177, %211 : vector<8x256xi1>
    %c24_i32 = arith.constant 24 : i32
    %213 = arith.addi %3, %c24_i32 : i32
    %c0_i32_67 = arith.constant 0 : i32
    %214 = arith.addi %213, %c0_i32_67 : i32
    %215 = arith.index_cast %214 : i32 to index
    %216 = memref.load %arg1[%215] : memref<64xi32, #tpu.memory_space<smem>>
    %c0_i32_68 = arith.constant 0 : i32
    %217 = arith.addi %216, %c0_i32_68 : i32
    %218 = vector.broadcast %217 : i32 to vector<8x256xi32>
    %219 = arith.cmpi eq, %0, %218 : vector<8x256xi32>
    %c24_i32_69 = arith.constant 24 : i32
    %220 = arith.addi %3, %c24_i32_69 : i32
    %c1_i32_70 = arith.constant 1 : i32
    %221 = arith.addi %220, %c1_i32_70 : i32
    %222 = arith.index_cast %221 : i32 to index
    %223 = memref.load %arg1[%222] : memref<64xi32, #tpu.memory_space<smem>>
    %c64_i32_71 = arith.constant 64 : i32
    %224 = arith.addi %223, %c64_i32_71 : i32
    %225 = vector.broadcast %224 : i32 to vector<8x256xi32>
    %226 = arith.cmpi eq, %0, %225 : vector<8x256xi32>
    %227 = arith.ori %219, %226 : vector<8x256xi1>
    %c24_i32_72 = arith.constant 24 : i32
    %228 = arith.addi %3, %c24_i32_72 : i32
    %c2_i32_73 = arith.constant 2 : i32
    %229 = arith.addi %228, %c2_i32_73 : i32
    %230 = arith.index_cast %229 : i32 to index
    %231 = memref.load %arg1[%230] : memref<64xi32, #tpu.memory_space<smem>>
    %c128_i32_74 = arith.constant 128 : i32
    %232 = arith.addi %231, %c128_i32_74 : i32
    %233 = vector.broadcast %232 : i32 to vector<8x256xi32>
    %234 = arith.cmpi eq, %0, %233 : vector<8x256xi32>
    %235 = arith.ori %227, %234 : vector<8x256xi1>
    %c24_i32_75 = arith.constant 24 : i32
    %236 = arith.addi %3, %c24_i32_75 : i32
    %c3_i32_76 = arith.constant 3 : i32
    %237 = arith.addi %236, %c3_i32_76 : i32
    %238 = arith.index_cast %237 : i32 to index
    %239 = memref.load %arg1[%238] : memref<64xi32, #tpu.memory_space<smem>>
    %c192_i32_77 = arith.constant 192 : i32
    %240 = arith.addi %239, %c192_i32_77 : i32
    %241 = vector.broadcast %240 : i32 to vector<8x256xi32>
    %242 = arith.cmpi eq, %0, %241 : vector<8x256xi32>
    %243 = arith.ori %235, %242 : vector<8x256xi1>
    %c6_i32 = arith.constant 6 : i32
    %244 = vector.broadcast %c6_i32 : i32 to vector<8x256xi32>
    %245 = arith.cmpi eq, %1, %244 : vector<8x256xi32>
    %246 = arith.andi %245, %243 : vector<8x256xi1>
    %247 = arith.ori %212, %246 : vector<8x256xi1>
    %c28_i32 = arith.constant 28 : i32
    %248 = arith.addi %3, %c28_i32 : i32
    %c0_i32_78 = arith.constant 0 : i32
    %249 = arith.addi %248, %c0_i32_78 : i32
    %250 = arith.index_cast %249 : i32 to index
    %251 = memref.load %arg1[%250] : memref<64xi32, #tpu.memory_space<smem>>
    %c0_i32_79 = arith.constant 0 : i32
    %252 = arith.addi %251, %c0_i32_79 : i32
    %253 = vector.broadcast %252 : i32 to vector<8x256xi32>
    %254 = arith.cmpi eq, %0, %253 : vector<8x256xi32>
    %c28_i32_80 = arith.constant 28 : i32
    %255 = arith.addi %3, %c28_i32_80 : i32
    %c1_i32_81 = arith.constant 1 : i32
    %256 = arith.addi %255, %c1_i32_81 : i32
    %257 = arith.index_cast %256 : i32 to index
    %258 = memref.load %arg1[%257] : memref<64xi32, #tpu.memory_space<smem>>
    %c64_i32_82 = arith.constant 64 : i32
    %259 = arith.addi %258, %c64_i32_82 : i32
    %260 = vector.broadcast %259 : i32 to vector<8x256xi32>
    %261 = arith.cmpi eq, %0, %260 : vector<8x256xi32>
    %262 = arith.ori %254, %261 : vector<8x256xi1>
    %c28_i32_83 = arith.constant 28 : i32
    %263 = arith.addi %3, %c28_i32_83 : i32
    %c2_i32_84 = arith.constant 2 : i32
    %264 = arith.addi %263, %c2_i32_84 : i32
    %265 = arith.index_cast %264 : i32 to index
    %266 = memref.load %arg1[%265] : memref<64xi32, #tpu.memory_space<smem>>
    %c128_i32_85 = arith.constant 128 : i32
    %267 = arith.addi %266, %c128_i32_85 : i32
    %268 = vector.broadcast %267 : i32 to vector<8x256xi32>
    %269 = arith.cmpi eq, %0, %268 : vector<8x256xi32>
    %270 = arith.ori %262, %269 : vector<8x256xi1>
    %c28_i32_86 = arith.constant 28 : i32
    %271 = arith.addi %3, %c28_i32_86 : i32
    %c3_i32_87 = arith.constant 3 : i32
    %272 = arith.addi %271, %c3_i32_87 : i32
    %273 = arith.index_cast %272 : i32 to index
    %274 = memref.load %arg1[%273] : memref<64xi32, #tpu.memory_space<smem>>
    %c192_i32_88 = arith.constant 192 : i32
    %275 = arith.addi %274, %c192_i32_88 : i32
    %276 = vector.broadcast %275 : i32 to vector<8x256xi32>
    %277 = arith.cmpi eq, %0, %276 : vector<8x256xi32>
    %278 = arith.ori %270, %277 : vector<8x256xi1>
    %c7_i32 = arith.constant 7 : i32
    %279 = vector.broadcast %c7_i32 : i32 to vector<8x256xi32>
    %280 = arith.cmpi eq, %1, %279 : vector<8x256xi32>
    %281 = arith.andi %280, %278 : vector<8x256xi1>
    %282 = arith.ori %247, %281 : vector<8x256xi1>
    %283 = arith.extui %282 : vector<8x256xi1> to vector<8x256xi32>
    %284 = arith.sitofp %283 : vector<8x256xi32> to vector<8x256xf32>
    %c0 = arith.constant 0 : index
    %c0_89 = arith.constant 0 : index
    %c0_90 = arith.constant 0 : index
    %285 = vector.load %arg2[%c0, %c0_89, %c0_90] : memref<1x8x128xf32, #tpu.memory_space<vmem>>, vector<1x8x128xf32>
    %286 = vector.shape_cast %285 : vector<1x8x128xf32> to vector<8x128xf32>
    %c0_91 = arith.constant 0 : index
    %c0_92 = arith.constant 0 : index
    %287 = vector.load %arg6[%c0_91, %c0_92] : memref<256x384xf32, #tpu.memory_space<vmem>>, vector<256x384xf32>
    %cst = arith.constant dense<0.000000e+00> : vector<8x384xf32>
    %288 = tpu.matmul %284, %287, %cst {dimension_numbers = #tpu.dot_dimension_numbers<[1], [0], [0], [1], [0, 0, 1, 1], [], []>} : vector<8x256xf32>, vector<256x384xf32>, vector<8x384xf32> -> vector<8x384xf32>
    %c0_93 = arith.constant 0 : index
    %c0_94 = arith.constant 0 : index
    %289 = vector.load %arg7[%c0_93, %c0_94] : memref<1x384xf32, #tpu.memory_space<vmem>>, vector<1x384xf32>
    %290 = vector.broadcast %289 : vector<1x384xf32> to vector<8x384xf32>
    %291 = arith.addf %288, %290 : vector<8x384xf32>
    %c0_95 = arith.constant 0 : index
    %c0_96 = arith.constant 0 : index
    %292 = vector.load %arg8[%c0_95, %c0_96] : memref<128x384xf32, #tpu.memory_space<vmem>>, vector<128x384xf32>
    %cst_97 = arith.constant dense<0.000000e+00> : vector<8x384xf32>
    %293 = tpu.matmul %286, %292, %cst_97 {dimension_numbers = #tpu.dot_dimension_numbers<[1], [0], [0], [1], [0, 0, 1, 1], [], []>} : vector<8x128xf32>, vector<128x384xf32>, vector<8x384xf32> -> vector<8x384xf32>
    %294 = vector.extract_strided_slice %291 {offsets = [0, 0], sizes = [8, 256], strides = [1, 1]} : vector<8x384xf32> to vector<8x256xf32>
    %295 = vector.extract_strided_slice %293 {offsets = [0, 0], sizes = [8, 256], strides = [1, 1]} : vector<8x384xf32> to vector<8x256xf32>
    %296 = arith.addf %294, %295 : vector<8x256xf32>
    %297 = arith.negf %296 : vector<8x256xf32>
    %298 = math.exp %297 : vector<8x256xf32>
    %cst_98 = arith.constant 1.000000e+00 : f32
    %299 = vector.broadcast %cst_98 : f32 to vector<8x256xf32>
    %300 = arith.addf %299, %298 : vector<8x256xf32>
    %301 = arith.divf %299, %300 : vector<8x256xf32>
    %302 = vector.extract_strided_slice %301 {offsets = [0, 0], sizes = [8, 128], strides = [1, 1]} : vector<8x256xf32> to vector<8x128xf32>
    %303 = vector.extract_strided_slice %301 {offsets = [0, 128], sizes = [8, 128], strides = [1, 1]} : vector<8x256xf32> to vector<8x128xf32>
    %304 = vector.extract_strided_slice %291 {offsets = [0, 256], sizes = [8, 128], strides = [1, 1]} : vector<8x384xf32> to vector<8x128xf32>
    %305 = vector.extract_strided_slice %293 {offsets = [0, 256], sizes = [8, 128], strides = [1, 1]} : vector<8x384xf32> to vector<8x128xf32>
    %c0_99 = arith.constant 0 : index
    %c0_100 = arith.constant 0 : index
    %306 = vector.load %arg9[%c0_99, %c0_100] : memref<1x128xf32, #tpu.memory_space<vmem>>, vector<1x128xf32>
    %307 = vector.broadcast %306 : vector<1x128xf32> to vector<8x128xf32>
    %308 = arith.addf %305, %307 : vector<8x128xf32>
    %309 = arith.mulf %302, %308 : vector<8x128xf32>
    %310 = arith.addf %304, %309 : vector<8x128xf32>
    %311 = math.tanh %310 : vector<8x128xf32>
    %cst_101 = arith.constant 1.000000e+00 : f32
    %312 = vector.broadcast %cst_101 : f32 to vector<8x128xf32>
    %313 = arith.subf %312, %303 : vector<8x128xf32>
    %314 = arith.mulf %313, %311 : vector<8x128xf32>
    %315 = arith.mulf %303, %286 : vector<8x128xf32>
    %316 = arith.addf %314, %315 : vector<8x128xf32>
    %c0_102 = arith.constant 0 : index
    %c0_103 = arith.constant 0 : index
    %317 = vector.load %arg10[%c0_102, %c0_103] : memref<128x128xf32, #tpu.memory_space<vmem>>, vector<128x128xf32>
    %cst_104 = arith.constant dense<0.000000e+00> : vector<8x128xf32>
    %318 = tpu.matmul %316, %317, %cst_104 {dimension_numbers = #tpu.dot_dimension_numbers<[1], [0], [0], [1], [0, 0, 1, 1], [], []>} : vector<8x128xf32>, vector<128x128xf32>, vector<8x128xf32> -> vector<8x128xf32>
    %c0_105 = arith.constant 0 : index
    %c0_106 = arith.constant 0 : index
    %319 = vector.load %arg11[%c0_105, %c0_106] : memref<1x128xf32, #tpu.memory_space<vmem>>, vector<1x128xf32>
    %320 = vector.broadcast %319 : vector<1x128xf32> to vector<8x128xf32>
    %321 = arith.addf %318, %320 : vector<8x128xf32>
    %c0_107 = arith.constant 0 : index
    %c0_108 = arith.constant 0 : index
    %c0_109 = arith.constant 0 : index
    %c0_110 = arith.constant 0 : index
    %322 = vector.load %arg3[%c0_107, %c0_108, %c0_109, %c0_110] : memref<1x8x8x128xf32, #tpu.memory_space<vmem>>, vector<1x8x8x128xf32>
    %323 = vector.shape_cast %322 : vector<1x8x8x128xf32> to vector<8x8x128xf32>
    %324 = vector.shape_cast %321 : vector<8x128xf32> to vector<1x8x128xf32>
    %325 = vector.broadcast %324 : vector<1x8x128xf32> to vector<8x8x128xf32>
    %326 = arith.addf %323, %325 : vector<8x8x128xf32>
    %327 = math.tanh %326 : vector<8x8x128xf32>
    %328 = vector.shape_cast %327 : vector<8x8x128xf32> to vector<64x128xf32>
    %c0_111 = arith.constant 0 : index
    %c0_112 = arith.constant 0 : index
    %329 = vector.load %arg12[%c0_111, %c0_112] : memref<128x4xf32, #tpu.memory_space<vmem>>, vector<128x4xf32>
    %cst_113 = arith.constant dense<0.000000e+00> : vector<64x4xf32>
    %330 = tpu.matmul %328, %329, %cst_113 {dimension_numbers = #tpu.dot_dimension_numbers<[1], [0], [0], [1], [0, 0, 1, 1], [], []>} : vector<64x128xf32>, vector<128x4xf32>, vector<64x4xf32> -> vector<64x4xf32>
    %331 = vector.shape_cast %330 : vector<64x4xf32> to vector<8x8x4xf32>
    %cst_114 = arith.constant dense<0xFF800000> : vector<8x4xf32>
    %332 = vector.multi_reduction <maximumf>, %331, %cst_114 [0] : vector<8x8x4xf32> to vector<8x4xf32>
    %333 = vector.shape_cast %332 : vector<8x4xf32> to vector<1x8x4xf32>
    %334 = vector.broadcast %333 : vector<1x8x4xf32> to vector<8x8x4xf32>
    %335 = arith.subf %331, %334 : vector<8x8x4xf32>
    %336 = math.exp %335 : vector<8x8x4xf32>
    %cst_115 = arith.constant dense<0.000000e+00> : vector<8x4xf32>
    %337 = vector.multi_reduction <add>, %336, %cst_115 [0] : vector<8x8x4xf32> to vector<8x4xf32>
    %338 = vector.shape_cast %337 : vector<8x4xf32> to vector<1x8x4xf32>
    %339 = tpu.reciprocal %338 {approx = true} : vector<1x8x4xf32> -> vector<1x8x4xf32>
    %340 = vector.broadcast %339 : vector<1x8x4xf32> to vector<8x8x4xf32>
    %341 = arith.mulf %336, %340 : vector<8x8x4xf32>
    %c0_116 = arith.constant 0 : index
    %c0_117 = arith.constant 0 : index
    %c0_118 = arith.constant 0 : index
    %c0_119 = arith.constant 0 : index
    %342 = vector.load %arg5[%c0_116, %c0_117, %c0_118, %c0_119] : memref<1x8x8x4xf32, #tpu.memory_space<vmem>>, vector<1x8x8x4xf32>
    %343 = vector.shape_cast %342 : vector<1x8x8x4xf32> to vector<8x8x4xf32>
    %344 = arith.mulf %341, %343 : vector<8x8x4xf32>
    %345 = vector.shape_cast %344 : vector<8x8x4xf32> to vector<64x4xf32>
    %c0_120 = arith.constant 0 : index
    %c0_121 = arith.constant 0 : index
    %346 = vector.load %arg13[%c0_120, %c0_121] : memref<4x128xf32, #tpu.memory_space<vmem>>, vector<4x128xf32>
    %cst_122 = arith.constant dense<0.000000e+00> : vector<64x128xf32>
    %347 = tpu.matmul %345, %346, %cst_122 {dimension_numbers = #tpu.dot_dimension_numbers<[1], [0], [0], [1], [0, 0, 1, 1], [], []>} : vector<64x4xf32>, vector<4x128xf32>, vector<64x128xf32> -> vector<64x128xf32>
    %348 = vector.shape_cast %347 : vector<64x128xf32> to vector<8x8x128xf32>
    %c0_123 = arith.constant 0 : index
    %c0_124 = arith.constant 0 : index
    %c0_125 = arith.constant 0 : index
    %c0_126 = arith.constant 0 : index
    %349 = vector.load %arg4[%c0_123, %c0_124, %c0_125, %c0_126] : memref<1x8x8x128xf32, #tpu.memory_space<vmem>>, vector<1x8x8x128xf32>
    %350 = vector.shape_cast %349 : vector<1x8x8x128xf32> to vector<8x8x128xf32>
    %351 = arith.mulf %348, %350 : vector<8x8x128xf32>
    %cst_127 = arith.constant dense<0.000000e+00> : vector<8x128xf32>
    %352 = vector.multi_reduction <add>, %351, %cst_127 [0] : vector<8x8x128xf32> to vector<8x128xf32>
    %c0_128 = arith.constant 0 : index
    %c0_129 = arith.constant 0 : index
    %353 = vector.load %arg14[%c0_128, %c0_129] : memref<128x128xf32, #tpu.memory_space<vmem>>, vector<128x128xf32>
    %cst_130 = arith.constant dense<0.000000e+00> : vector<8x128xf32>
    %354 = tpu.matmul %352, %353, %cst_130 {dimension_numbers = #tpu.dot_dimension_numbers<[1], [0], [0], [1], [0, 0, 1, 1], [], []>} : vector<8x128xf32>, vector<128x128xf32>, vector<8x128xf32> -> vector<8x128xf32>
    %c0_131 = arith.constant 0 : index
    %c0_132 = arith.constant 0 : index
    %355 = vector.load %arg15[%c0_131, %c0_132] : memref<128x128xf32, #tpu.memory_space<vmem>>, vector<128x128xf32>
    %cst_133 = arith.constant dense<0.000000e+00> : vector<8x128xf32>
    %356 = tpu.matmul %316, %355, %cst_133 {dimension_numbers = #tpu.dot_dimension_numbers<[1], [0], [0], [1], [0, 0, 1, 1], [], []>} : vector<8x128xf32>, vector<128x128xf32>, vector<8x128xf32> -> vector<8x128xf32>
    %357 = arith.addf %354, %356 : vector<8x128xf32>
    %c0_134 = arith.constant 0 : index
    %c0_135 = arith.constant 0 : index
    %358 = vector.load %arg16[%c0_134, %c0_135] : memref<1x128xf32, #tpu.memory_space<vmem>>, vector<1x128xf32>
    %359 = vector.broadcast %358 : vector<1x128xf32> to vector<8x128xf32>
    %360 = arith.addf %357, %359 : vector<8x128xf32>
    %361 = math.tanh %360 : vector<8x128xf32>
    %c0_136 = arith.constant 0 : index
    %c0_137 = arith.constant 0 : index
    %c0_138 = arith.constant 0 : index
    %362 = vector.load %arg17[%c0_136, %c0_137, %c0_138] : memref<1x8x128xf32, #tpu.memory_space<vmem>>, vector<1x8x128xf32>
    %363 = vector.shape_cast %362 : vector<1x8x128xf32> to vector<8x128xf32>
    %364 = vector.shape_cast %361 : vector<8x128xf32> to vector<1x8x128xf32>
    tpu.vector_store %arg17[%c0_136, %c0_137, %c0_138], %364 {strides = array<i32>} : memref<1x8x128xf32, #tpu.memory_space<vmem>>, vector<1x8x128xf32>,
    return
  }
  func.func @transform_0(%arg0: i32) -> i32 {
    %c0_i32 = arith.constant 0 : i32
    %c0_i32_0 = arith.constant 0 : i32
    return %c0_i32 : i32
  }
  func.func @transform_1(%arg0: i32) -> (i32, i32, i32) {
    %c0_i32 = arith.constant 0 : i32
    %c0_i32_0 = arith.constant 0 : i32
    %c0_i32_1 = arith.constant 0 : i32
    return %arg0, %c0_i32, %c0_i32_0 : i32, i32, i32
  }
  func.func @transform_2(%arg0: i32) -> (i32, i32, i32, i32) {
    %c0_i32 = arith.constant 0 : i32
    %c0_i32_0 = arith.constant 0 : i32
    %c0_i32_1 = arith.constant 0 : i32
    %c0_i32_2 = arith.constant 0 : i32
    return %arg0, %c0_i32, %c0_i32_0, %c0_i32_1 : i32, i32, i32, i32
  }
  func.func @transform_3(%arg0: i32) -> (i32, i32, i32, i32) {
    %c0_i32 = arith.constant 0 : i32
    %c0_i32_0 = arith.constant 0 : i32
    %c0_i32_1 = arith.constant 0 : i32
    %c0_i32_2 = arith.constant 0 : i32
    return %arg0, %c0_i32, %c0_i32_0, %c0_i32_1 : i32, i32, i32, i32
  }
  func.func @transform_4(%arg0: i32) -> (i32, i32, i32, i32) {
    %c0_i32 = arith.constant 0 : i32
    %c0_i32_0 = arith.constant 0 : i32
    %c0_i32_1 = arith.constant 0 : i32
    %c0_i32_2 = arith.constant 0 : i32
    return %arg0, %c0_i32, %c0_i32_0, %c0_i32_1 : i32, i32, i32, i32
  }
  func.func @transform_5(%arg0: i32) -> (i32, i32) {
    %c0_i32 = arith.constant 0 : i32
    %c0_i32_0 = arith.constant 0 : i32
    %c0_i32_1 = arith.constant 0 : i32
    return %c0_i32, %c0_i32_0 : i32, i32
  }
  func.func @transform_6(%arg0: i32) -> (i32, i32) {
    %c0_i32 = arith.constant 0 : i32
    %c0_i32_0 = arith.constant 0 : i32
    %c0_i32_1 = arith.constant 0 : i32
    return %c0_i32, %c0_i32_0 : i32, i32
  }
  func.func @transform_7(%arg0: i32) -> (i32, i32) {
    %c0_i32 = arith.constant 0 : i32
    %c0_i32_0 = arith.constant 0 : i32
    %c0_i32_1 = arith.constant 0 : i32
    return %c0_i32, %c0_i32_0 : i32, i32
  }
  func.func @transform_8(%arg0: i32) -> (i32, i32) {
    %c0_i32 = arith.constant 0 : i32
    %c0_i32_0 = arith.constant 0 : i32
    %c0_i32_1 = arith.constant 0 : i32
    return %c0_i32, %c0_i32_0 : i32, i32
  }
  func.func @transform_9(%arg0: i32) -> (i32, i32) {
    %c0_i32 = arith.constant 0 : i32
    %c0_i32_0 = arith.constant 0 : i32
    %c0_i32_1 = arith.constant 0 : i32
    return %c0_i32, %c0_i32_0 : i32, i32
  }
  func.func @transform_10(%arg0: i32) -> (i32, i32) {
    %c0_i32 = arith.constant 0 : i32
    %c0_i32_0 = arith.constant 0 : i32
    %c0_i32_1 = arith.constant 0 : i32
    return %c0_i32, %c0_i32_0 : i32, i32
  }
  func.func @transform_11(%arg0: i32) -> (i32, i32) {
    %c0_i32 = arith.constant 0 : i32
    %c0_i32_0 = arith.constant 0 : i32
    %c0_i32_1 = arith.constant 0 : i32
    return %c0_i32, %c0_i32_0 : i32, i32
  }
  func.func @transform_12(%arg0: i32) -> (i32, i32) {
    %c0_i32 = arith.constant 0 : i32
    %c0_i32_0 = arith.constant 0 : i32
    %c0_i32_1 = arith.constant 0 : i32
    return %c0_i32, %c0_i32_0 : i32, i32
  }
  func.func @transform_13(%arg0: i32) -> (i32, i32) {
    %c0_i32 = arith.constant 0 : i32
    %c0_i32_0 = arith.constant 0 : i32
    %c0_i32_1 = arith.constant 0 : i32
    return %c0_i32, %c0_i32_0 : i32, i32
  }
  func.func @transform_14(%arg0: i32) -> (i32, i32) {
    %c0_i32 = arith.constant 0 : i32
    %c0_i32_0 = arith.constant 0 : i32
    %c0_i32_1 = arith.constant 0 : i32
    return %c0_i32, %c0_i32_0 : i32, i32
  }
  func.func @transform_15(%arg0: i32) -> (i32, i32) {
    %c0_i32 = arith.constant 0 : i32
    %c0_i32_0 = arith.constant 0 : i32
    %c0_i32_1 = arith.constant 0 : i32
    return %c0_i32, %c0_i32_0 : i32, i32
  }
  func.func @transform_16(%arg0: i32) -> (i32, i32, i32) {
    %c0_i32 = arith.constant 0 : i32
    %c0_i32_0 = arith.constant 0 : i32
    %c0_i32_1 = arith.constant 0 : i32
    return %arg0, %c0_i32, %c0_i32_0 : i32, i32, i32
  }
}

</mosaic_0001>

<bundles_post_ra>
// kernel: tpu_custom_call.1
= control target key start
LH: loop header
LB: loop body
LE: loop exit
PB: predicated region body
PF: predicated region fallthrough
CT: control target
= control target key end

     0   :  { %s4066_s0 = inlined_call_operand.vmem [shape: s32[64], index: 0, kind: input, shape index: {}]   ;;  %s4067_s1 = inlined_call_operand.vmem [shape: f32[2,8,128], index: 1, kind: input, shape index: {}]   ;;  %s4068_s2 = inlined_call_operand.vmem [shape: f32[2,8,8,128], index: 2, kind: input, shape index: {}]   ;;  %s4069_s3 = inlined_call_operand.vmem [shape: f32[2,8,8,128], index: 3, kind: input, shape index: {}]   ;;  %s4070_s4 = inlined_call_operand.vmem [shape: f32[2,8,8,4], index: 4, kind: input, shape index: {}]   ;;  %s4071_s5 = inlined_call_operand.hbm [shape: f32[256,384], index: 5, kind: input, shape index: {}]   ;;  %s4072_s6 = inlined_call_operand.vmem [shape: f32[1,384], index: 6, kind: input, shape index: {}]   ;;  %s4073_s7 = inlined_call_operand.hbm [shape: f32[128,384], index: 7, kind: input, shape index: {}]   ;;  %s4074_s8 = inlined_call_operand.vmem [shape: f32[1,128], index: 8, kind: input, shape index: {}]   ;;  %s4075_s9 = inlined_call_operand.hbm [shape: f32[128,128], index: 9, kind: input, shape index: {}]   ;;  %s4076_s10 = inlined_call_operand.vmem [shape: f32[1,128], index: 10, kind: input, shape index: {}]   ;;  %s4077_s11 = inlined_call_operand.vmem [shape: f32[128,4], index: 11, kind: input, shape index: {}]   ;;  %s4078_s12 = inlined_call_operand.vmem [shape: f32[4,128], index: 12, kind: input, shape index: {}]   ;;  %s4079_s13 = inlined_call_operand.hbm [shape: f32[128,128], index: 13, kind: input, shape index: {}]   ;;  %s4080_s14 = inlined_call_operand.hbm [shape: f32[128,128], index: 14, kind: input, shape index: {}]   ;;  %s4081_s15 = inlined_call_operand.vmem [shape: f32[1,128], index: 15, kind: input, shape index: {}]   ;;  %s4082_s16 = inlined_call_operand.hbm [shape: f32[2,8,128], index: 16, kind: output, shape index: {}]  }
   0x1   :  { %4102 = sst [smem:[#allocation26_spill]] %s4066_s0 }
   0x2   :  { %4103 = sst [smem:[#allocation27_spill]] %s4071_s5 }
   0x3   :  { %4104 = sst [smem:[#allocation28_spill]] %s4073_s7 }
   0x4   :  { %4105 = sst [smem:[#allocation29_spill]] %s4075_s9 }
   0x5   :  { %4106 = sst [smem:[#allocation30_spill]] %s4079_s13 }
   0x6   :  { %4107 = sst [smem:[#allocation31_spill]] %s4080_s14 }
   0x7   :  { %4108 = sst [smem:[#allocation32_spill]] %s4081_s15 }
   0x8   :  { %4109 = sst [smem:[#allocation33_spill]] %s4082_s16 }
   0x9   :  { %21 = vsyncpa [#allocation5], 0 }
   0xa   :  { %22 = vsyncpa [#allocation3], 0 }
   0xb   :  { %23 = vsyncpa [#allocation8], 0 }
   0xc   :  { %24 = vsyncpa [#allocation11], 0 }
   0xd   :  { %25 = vsyncpa [#allocation4], 0 }
   0xe   :  { %27 = vsyncpa [#allocation4 + $0x1], 0  ;;  %s3099_s21 = smov 0   ;;  %s3101_s22 = smov 0  }
   0xf   :  { %s3103_s23 = smov 0   ;;  %s3105_s24 = smov 0  }
  0x10 LB: > { %4110 = sst [smem:[#allocation19_spill]] %s2987_s21  ;;  %s3120_s25 = sadd.s32 4294967295, %s2999_s24   ;;  %s2999_s24 = sphi %s3105_s24, %s4194_s24   ;;  %s2995_s23 = sphi %s3103_s23, %s4196_s23   ;;  %s2991_s22 = sphi %s3101_s22, %s4198_s22   ;;  %s2987_s21 = sphi %s3099_s21, %s4197_s21  }
  0x11   : > { %4111 = sst [smem:[#allocation20_spill]] %s2995_s23  ;;  %s2244_s26 = sadd.s32 4294967294, %s2999_s24  }
  0x12   : > { %4112 = sst [smem:[#allocation21_spill]] %s2999_s24  ;;  %s3124_s27 = sadd.s32 1, %s2999_s24  }
  0x13   : > { %4113 = sst [smem:[#allocation22_spill]] %s3124_s27  ;;  %s396_s28 = sadd.s32 1, %s2995_s23 }
  0x14   : > { %s393_s29 = ssub.s32 %s2999_s24, %s3124_s27  ;;  %p406_p0 = scmp.ne.s32.totalorder %s2995_s23, %s2991_s22 }
  0x15   : > { %p394_p1 = scmp.eq.s32.totalorder %s393_s29, 0  ;;  %p407_p2 = scmp.eq.s32.totalorder %s3120_s25, 1 }
  0x16   : > { %p412_p3 = scmp.ne.s32.totalorder %s2991_s22, %s2987_s21  ;;  %p413_p4 = scmp.eq.s32.totalorder %s2244_s26, 1 }
  0x17   : > { %s3135_s30 = scalar_select %p394_p1, %s2995_s23, %s396_s28  }
  0x18   : > { %p3137_p5 = por %p407_p2, %p406_p0  ;;  %p3141_p6 = por %p413_p4, %p412_p3 }
  0x19   : > { %4114 = sst [smem:[#allocation23_spill]] %s3135_s30  ;;  %p2245_p7 = scmp.ge.s32.totalorder %s2999_s24, 1 }
  0x1a   : > { %s4115_s0 = scalar_select %p3137_p5, 1, 0 }
  0x1b   : > { %s4117_s17 = scalar_select %p3141_p6, 1, 0 }
  0x1c   : > { %4116 = sst [smem:[#allocation24_spill]] %s4115_s0  ;;  %p420_p8 = scmp.lt.s32.totalorder %s2999_s24, 3 }
  0x1d   : > { %4118 = sst [smem:[#allocation25_spill]] %s4117_s17  ;;  %p4092_p9 = scmp.eq.s32.totalorder %s3120_s25, 0 }
  0x1e   : > { %p3148_p10 = pnand %p2245_p7, %p420_p8  ;;  %s3001_s19 = smov [#allocation7]  }
  0x1f   : > { %s459_s20 = sshll.u32 %s3001_s19, 4  ;;  %s4121_s30 = sld [smem:[#allocation26_spill]]  ;;  %s460_s20 = int_to_ptr.vmem [resolvable:$true] %s459_s20 }
  0x20   : > { %p2652_p11 = pneg %p3148_p10  ;;  %s3002_s27 = smov [#allocation10]  }
  0x21   : > { %s497_s17 = sshll.u32 %s3002_s27, 4  ;;  %s2789_s19 = scalar_lea.vmem %s460_s20, 6144  ;;  %s498_s17 = int_to_ptr.vmem [resolvable:$true] %s497_s17 }
  0x22   : > { %p3156_p12 = pnand %p4092_p9, %p2652_p11  ;;  %p2790_p0 = scmp.ne.s32.totalorder %s460_s20, %s2789_s19 }
  0x23   : > { %p2797_p3 = scmp.lt.s32.totalorder %s460_s20, %s460_s20  ;;  %p2798_p4 = scmp.lt.s32.totalorder %s2789_s19, %s2789_s19 }
  0x24   : > { %p3165_p13 = pneg %p3156_p12 }
  0x25   : > { %s433_s23 = sshll.u32 %s4121_s30, 4  ;;  %p2799_p7 = por %p2798_p4, %p2797_p3  ;;  %s434_s23 = int_to_ptr.vmem [resolvable:$true] %s433_s23 }
  0x26   : > { %p2792_p1 = pnand %p2790_p0, %p3165_p13 }
  0x28   : > { %p2793_p2 = pneg %p2792_p1 }
  0x2a   : > { %p2800_p8 = pnand %p2799_p7, %p2793_p2 }
  0x2c   : > { %2803 = shalt.err (!%p2800_p8)
}
  0x2d   : > { %s4090_s28 = smov 384   ;;  %s4091_s27 = smov 24  }
  0x2e   : > { %s4123_s7 = sld [smem:[#allocation28_spill]]  ;;  %s2815_s24 = scalar_lea.vmem %s498_s17, 2048 }
  0x2f   : > { %p2816_p11 = scmp.ne.s32.totalorder %s498_s17, %s2815_s24  ;;  %p2823_p2 = scmp.lt.s32.totalorder %s498_s17, %s498_s17 }
  0x30   : > { %p2824_p3 = scmp.lt.s32.totalorder %s2815_s24, %s2815_s24 }
  0x31   : > { %p2818_p0 = pnand %p2816_p11, %p3165_p13 }
  0x32   : > { %p2825_p4 = por %p2824_p3, %p2823_p2 }
  0x33   : > { %p2819_p1 = pneg %p2818_p0 }
  0x34   : > { %2661 = dma.hbm_to_vmem [thread:$0]  (!%p3156_p12), %s4123_s7, 6144, %s460_s20, [#allocation8], %s4090_s28, %s4090_s28, %s4091_s27  }
  0x35   : > { %p2826_p7 = pnand %p2825_p4, %p2819_p1 }
  0x37   : > { %2829 = shalt.err (!%p2826_p7)
}
  0x38   : > { %s4093_s19 = smov 128   ;;  %s3006_s16 = smov 8  }
  0x39   : > { %s4124_s13 = sld [smem:[#allocation30_spill]]  ;;  %s2830_s29 = scalar_lea.vmem %s434_s23, 16 }
  0x3a   : > { %p2831_p8 = scmp.ne.s32.totalorder %s434_s23, %s2830_s29  ;;  %p2838_p2 = scmp.lt.s32.totalorder %s434_s23, %s434_s23 }
  0x3b   : > { %p2839_p1 = scmp.lt.s32.totalorder %s2830_s29, %s2830_s29 }
  0x3c   : > { %p2833_p11 = pnand %p2831_p8, %p3165_p13 }
  0x3d   : > { %p2840_p3 = por %p2839_p1, %p2838_p2 }
  0x3e   : > { %p2834_p0 = pneg %p2833_p11 }
  0x3f   : > { %2667 = dma.hbm_to_vmem [thread:$0]  (!%p3156_p12), %s4124_s13, 2048, %s498_s17, [#allocation11], %s4093_s19, %s4093_s19, %s3006_s16  }
  0x40   : > { %p2841_p4 = pnand %p2840_p3, %p2834_p0 }
  0x42   : > { %2844 = shalt.err (!%p2841_p4)
}
  0x43   : > { %s3007_s24 = smov [#allocation2]   ;;  %s3008_s28 = smov [#allocation6]  }
  0x44   : > { %2655 = dma.vmem_to_smem (!%p3156_p12), %s434_s23, 16, %s3007_s24, [#allocation5]  }
  0x45   : > { %s443_s27 = sshll.u32 %s3008_s28, 4  ;;  %s3009_s20 = smov [#allocation9]   ;;  %s444_s27 = int_to_ptr.vmem [resolvable:$true] %s443_s27 }
  0x46   : > { %s475_s17 = sshll.u32 %s3009_s20, 4  ;;  %s2856_s30 = scalar_lea.vmem %s444_s27, 12288  ;;  %s476_s17 = int_to_ptr.vmem [resolvable:$true] %s475_s17 }
  0x47   : > { %p2857_p7 = scmp.ne.s32.totalorder %s444_s27, %s2856_s30  ;;  %p2864_p9 = scmp.lt.s32.totalorder %s444_s27, %s444_s27 }
  0x48   : > { %p2865_p6 = scmp.lt.s32.totalorder %s2856_s30, %s2856_s30 }
  0x49   : > { %p2859_p8 = pnand %p2857_p7, %p3165_p13 }
  0x4a   : > { %p2866_p2 = por %p2865_p6, %p2864_p9 }
  0x4b   : > { %p2860_p11 = pneg %p2859_p8 }
  0x4d   : > { %p2867_p0 = pnand %p2866_p2, %p2860_p11 }
  0x4f   : > { %2870 = shalt.err (!%p2867_p0)
}
  0x50   : > { %s4125_s29 = smov 24   ;;  %s4126_s19 = smov 384  }
  0x51   : > { %s4127_s5 = sld [smem:[#allocation27_spill]]  ;;  %s2882_s24 = scalar_lea.vmem %s476_s17, 2048 }
  0x52   : > { %p2883_p1 = scmp.ne.s32.totalorder %s476_s17, %s2882_s24  ;;  %p2890_p7 = scmp.lt.s32.totalorder %s476_s17, %s476_s17 }
  0x53   : > { %p2891_p6 = scmp.lt.s32.totalorder %s2882_s24, %s2882_s24 }
  0x54   : > { %p2885_p3 = pnand %p2883_p1, %p3165_p13 }
  0x55   : > { %p2892_p9 = por %p2891_p6, %p2890_p7 }
  0x56   : > { %p2886_p4 = pneg %p2885_p3 }
  0x57   : > { %2658 = dma.hbm_to_vmem [thread:$0]  (!%p3156_p12), %s4127_s5, 12288, %s444_s27, [#allocation3], %s4126_s19, %s4126_s19, %s4125_s29  }
  0x58   : > { %p2893_p8 = pnand %p2892_p9, %p2886_p4 }
  0x5a   : > { %2896 = shalt.err (!%p2893_p8)
}
  0x5b   : > { %s4128_s20 = smov 128   ;;  %s4129_s9 = sld [smem:[#allocation29_spill]] }
  0x5c   : > { %s3010_s27 = smov [#allocation12]  }
  0x5d   : > { %s510_s19 = sshll.u32 %s3010_s27, 4  ;;  %s511_s19 = int_to_ptr.vmem [resolvable:$true] %s510_s19 }
  0x5e   : > { %s2908_s29 = scalar_lea.vmem %s511_s19, 2048  ;;  %p2916_p1 = scmp.lt.s32.totalorder %s511_s19, %s511_s19 }
  0x5f   : > { %p2909_p11 = scmp.ne.s32.totalorder %s511_s19, %s2908_s29  ;;  %p2917_p3 = scmp.lt.s32.totalorder %s2908_s29, %s2908_s29 }
  0x61   : > { %2664 = dma.hbm_to_vmem [thread:$0]  (!%p3156_p12), %s4129_s9, 2048, %s476_s17, [#allocation8], %s4128_s20, %s4128_s20, %s3006_s16  }
  0x62   : > { %p2911_p2 = pnand %p2909_p11, %p3165_p13  ;;  %p2918_p4 = por %p2917_p3, %p2916_p1 }
  0x64   : > { %p2912_p0 = pneg %p2911_p2 }
  0x66   : > { %p2919_p7 = pnand %p2918_p4, %p2912_p0 }
  0x68   : > { %2922 = shalt.err (!%p2919_p7)
}
  0x69   : > { %s4130_s14 = sld [smem:[#allocation31_spill]]  ;;  %p4131_p13 = scmp.eq.s32.totalorder (!%p3148_p10), %s3120_s25, 0 }
  0x6b   : > { %560 = sbr.rel (%p3148_p10) target bundleno = 1418 (0x58a), region = 84 }
  0x6f   : > { %2670 = dma.hbm_to_vmem [thread:$0]  (!%p3156_p12), %s4130_s14, 2048, %s511_s19, [#allocation11], %s4128_s20, %s4128_s20, %s3006_s16  }
  0x70   : > { %2966 = dma.done.wait (%p4131_p13), [#allocation5], 16   ;;  %p4132_p6 = pmov %p4131_p13 }
  0x72   : > { %2968 = vsyncadd (%p4132_p6), [#allocation5], 4294967280  ;;  %p4133_p9 = pmov %p4132_p6 }
  0x73   : > { %p4134_p8 = pmov %p4132_p6 }
  0x74   : > { %2970 = dma.done.wait (%p4133_p9), [#allocation3], 12288  }
  0x75   : > { %2972 = vsyncadd (%p4134_p8), [#allocation3], 4294955008  ;;  %p4135_p11 = pmov %p4132_p6 }
  0x76   : > { %p4136_p12 = pmov %p4132_p6 }
  0x77   : > { %2974 = dma.done.wait (%p4135_p11), [#allocation8], 8192  }
  0x78   : > { %2976 = vsyncadd (%p4136_p12), [#allocation8], 4294959104  ;;  %p4137_p10 = pmov %p4132_p6 }
  0x79   : > { %p4138_p2 = pmov %p4132_p6 }
  0x7a   : > { %2978 = dma.done.wait (%p4137_p10), [#allocation11], 4096  }
  0x7b   : > { %2980 = vsyncadd (%p4138_p2), [#allocation11], 4294963200 }
  0x7c   : > { %586 = sfence }
  0x7d   : > { %v990_v0 = vld [vmem:[#allocation6 + $0x170] sm:$0xff]  ;;  %v1039_v1 = vld [vmem:[#allocation6 + $0x2f8] sm:$0xff]  ;;  %v989_v2 = vld [vmem:[#allocation6 + $0x168] sm:$0xff]  ;;  %s3242_s16 = sshll.u32 %s3120_s25, 5  ;;  %v664_v18 = vlaneseq  ;;  %p645_p0 = scmp.lt.s32.totalorder %s3120_s25, 1 }
  0x7e   : > { %1057 = vmatprep.subr.mxu0 %v990_v0  ;;  %2292 = vmatprep.subr.mxu1 %v1039_v1  ;;  %v991_v3 = vld [vmem:[#allocation6 + $0x178] sm:$0xff]  ;;  %v1036_v5 = vld [vmem:[#allocation6 + $0x2e0] sm:$0xff]  ;;  %s3245_s21 = sld [smem:[#allocation2 + %s3242_s16]]  ;;  %s674_s18 = sadd.s32 1, %s3242_s16  ;;  %v986_v6 = vld [vmem:[#allocation6 + $0x150] sm:$0xff] }
  0x7f   : > { %v987_v4 = vld [vmem:[#allocation6 + $0x158] sm:$0xff]  ;;  %1058 = vmatpush1.msra.mxu0 %v989_v2  ;;  %2293 = vmatpush3.msra.mxu1 %v991_v3  ;;  %v988_v7 = vld [vmem:[#allocation6 + $0x160] sm:$0xff]  ;;  %s3248_s26 = sld [smem:[#allocation2 + %s674_s18]]  ;;  %v1033_v9 = vld [vmem:[#allocation6 + $0x2c8] sm:$0xff]  ;;  %s682_s24 = sadd.s32 2, %s3242_s16  ;;  %v3269_v27 = vand.u32 127, %v664_v18 }
  0x80   : > { %v984_v8 = vld [vmem:[#allocation6 + $0x140] sm:$0xff]  ;;  %1059 = vmatprep.subr.mxu0 %v987_v4  ;;  %2294 = vmatprep.subr.mxu1 %v1036_v5  ;;  %v983_v10 = vld [vmem:[#allocation6 + $0x138] sm:$0xff]  ;;  %v985_v11 = vld [vmem:[#allocation6 + $0x148] sm:$0xff]  ;;  %s690_s20 = sadd.s32 3, %s3242_s16  ;;  %s3252_s30 = sld [smem:[#allocation2 + %s682_s24]]  ;;  %v3303_v46 = vshrl.u32 %v664_v18, 7 }
  0x81   : > { %1060 = vmatpush1.msra.mxu0 %v986_v6  ;;  %2295 = vmatpush3.msra.mxu1 %v988_v7  ;;  %v981_v12 = vld [vmem:[#allocation6 + $0x128] sm:$0xff]  ;;  %v1030_v13 = vld [vmem:[#allocation6 + $0x2b0] sm:$0xff]  ;;  %v980_v14 = vld [vmem:[#allocation6 + $0x120] sm:$0xff]  ;;  %s3254_s23 = sld [smem:[#allocation2 + %s690_s20]]  ;;  %s701_s27 = sadd.s32 4, %s3242_s16  ;;  %v3283_v36 = vadd.s32 128, %v3269_v27 }
  0x82   : > { %1061 = vmatprep.subr.mxu0 %v984_v8  ;;  %2296 = vmatprep.subr.mxu1 %v1033_v9  ;;  %v982_v15 = vld [vmem:[#allocation6 + $0x130] sm:$0xff]  ;;  %v1027_v17 = vld [vmem:[#allocation6 + $0x298] sm:$0xff]  ;;  %s3257_s19 = sld [smem:[#allocation2 + %s701_s27]]  ;;  %s706_s29 = sadd.s32 5, %s3242_s16  ;;  %v977_v19 = vld [vmem:[#allocation6 + $0x108] sm:$0xff]  ;;  %vm698_vm5 = vcmp.eq.s32.totalorder %v3303_v46, 0 }
  0x83   : > { %1062 = vmatpush1.msra.mxu0 %v983_v10  ;;  %2297 = vmatpush3.msra.mxu1 %v985_v11  ;;  %v978_v16 = vld [vmem:[#allocation6 + $0x110] sm:$0xff]  ;;  %v979_v20 = vld [vmem:[#allocation6 + $0x118] sm:$0xff]  ;;  %s3260_s28 = sld [smem:[#allocation2 + %s706_s29]]  ;;  %s714_s17 = sadd.s32 6, %s3242_s16  ;;  %v1024_v22 = vld [vmem:[#allocation6 + $0x280] sm:$0xff]  ;;  %vm730_vm14 = vcmp.eq.s32.totalorder %v3303_v46, 1 }
  0x84   : > { %1063 = vmatprep.subr.mxu0 %v981_v12  ;;  %2298 = vmatprep.subr.mxu1 %v1030_v13  ;;  %v975_v21 = vld [vmem:[#allocation6 + $0xf8] sm:$0xff]  ;;  %s3264_s24 = sld [smem:[#allocation2 + %s714_s17]]  ;;  %v974_v23 = vld [vmem:[#allocation6 + $0xf0] sm:$0xff]  ;;  %v976_v24 = vld [vmem:[#allocation6 + $0x100] sm:$0xff]  ;;  %s722_s20 = sadd.s32 7, %s3242_s16  ;;  %v671_v39 = vstv %s3245_s21 }
  0x85   : > { %1064 = vmatpush1.msra.mxu0 %v980_v14  ;;  %2299 = vmatpush3.msra.mxu1 %v982_v15  ;;  %s735_s27 = sadd.s32 8, %s3242_s16  ;;  %v972_v25 = vld [vmem:[#allocation6 + $0xe0] sm:$0xff]  ;;  %v1021_v26 = vld [vmem:[#allocation6 + $0x268] sm:$0xff]  ;;  %s3272_s18 = sld [smem:[#allocation2 + %s722_s20]]  ;;  %v971_v28 = vld [vmem:[#allocation6 + $0xd8] sm:$0xff]  ;;  %vm3315_vm0 = vcmp.eq.s32.totalorder %v3283_v36, %v671_v39 }
  0x86   : > { %1065 = vmatprep.subr.mxu0 %v978_v16  ;;  %2300 = vmatprep.subr.mxu1 %v1027_v17  ;;  %v973_v29 = vld [vmem:[#allocation6 + $0xe8] sm:$0xff]  ;;  %s3275_s5 = sld [smem:[#allocation2 + %s735_s27]]  ;;  %v1018_v31 = vld [vmem:[#allocation6 + $0x250] sm:$0xff]  ;;  %s740_s7 = sadd.s32 9, %s3242_s16  ;;  %v968_v32 = vld [vmem:[#allocation6 + $0xc0] sm:$0xff] }
  0x87   : > { %1066 = vmatpush1.msra.mxu0 %v977_v19  ;;  %2301 = vmatpush3.msra.mxu1 %v979_v20  ;;  %v969_v30 = vld [vmem:[#allocation6 + $0xc8] sm:$0xff]  ;;  %s748_s9 = sadd.s32 10, %s3242_s16  ;;  %v970_v33 = vld [vmem:[#allocation6 + $0xd0] sm:$0xff]  ;;  %s3280_s29 = sld [smem:[#allocation2 + %s740_s7]]  ;;  %v1015_v35 = vld [vmem:[#allocation6 + $0x238] sm:$0xff] }
  0x88   : > { %1067 = vmatprep.subr.mxu0 %v975_v21  ;;  %2302 = vmatprep.subr.mxu1 %v1024_v22  ;;  %v966_v34 = vld [vmem:[#allocation6 + $0xb0] sm:$0xff]  ;;  %s3286_s17 = sld [smem:[#allocation2 + %s748_s9]]  ;;  %v965_v37 = vld [vmem:[#allocation6 + $0xa8] sm:$0xff]  ;;  %v967_v38 = vld [vmem:[#allocation6 + $0xb8] sm:$0xff]  ;;  %s4139_s20 = sadd.s32 64, %s3248_s26  ;;  %v703_v53 = vstv %s3257_s19 }
  0x89   : > { %1068 = vmatpush1.msra.mxu0 %v974_v23  ;;  %2303 = vmatpush3.msra.mxu1 %v976_v24  ;;  %v3291_v40 = vstv %s4139_s20  ;;  %s756_s7 = sadd.s32 11, %s3242_s16  ;;  %s769_s13 = sadd.s32 12, %s3242_s16  ;;  %v963_v41 = vld [vmem:[#allocation6 + $0x98] sm:$0xff]  ;;  %v1012_v42 = vld [vmem:[#allocation6 + $0x220] sm:$0xff]  ;;  %v962_v44 = vld [vmem:[#allocation6 + $0x90] sm:$0xff]  ;;  %vm3361_vm7 = vcmp.eq.s32.totalorder %v3283_v36, %v703_v53 }
  0x8a   : > { %1069 = vmatprep.subr.mxu0 %v972_v25  ;;  %2304 = vmatprep.subr.mxu1 %v1021_v26  ;;  %s4140_s14 = sadd.s32 128, %s3252_s30  ;;  %s3300_s27 = sld [smem:[#allocation2 + %s756_s7]]  ;;  %v964_v45 = vld [vmem:[#allocation6 + $0xa0] sm:$0xff]  ;;  %v1009_v49 = vld [vmem:[#allocation6 + $0x208] sm:$0xff]  ;;  %vm679_vm1 = vcmp.eq.s32.totalorder %v3283_v36, %v3291_v40  ;;  %v959_v51 = vld [vmem:[#allocation6 + $0x78] sm:$0xff] }
  0x8b   : > { %1070 = vmatpush1.msra.mxu0 %v971_v28  ;;  %2305 = vmatpush3.msra.mxu1 %v973_v29  ;;  %v3297_v43 = vstv %s4140_s14  ;;  %s4141_s26 = sadd.s32 192, %s3254_s23  ;;  %s3309_s20 = sld [smem:[#allocation2 + %s769_s13]]  ;;  %v960_v48 = vld [vmem:[#allocation6 + $0x80] sm:$0xff]  ;;  %v961_v52 = vld [vmem:[#allocation6 + $0x88] sm:$0xff]  ;;  %v1006_v56 = vld [vmem:[#allocation6 + $0x1f0] sm:$0xff] }
  0x8c   : > { %1071 = vmatprep.subr.mxu0 %v969_v30  ;;  %2306 = vmatprep.subr.mxu1 %v1018_v31  ;;  %v3307_v47 = vstv %s4141_s26  ;;  %s774_s14 = sadd.s32 13, %s3242_s16  ;;  %s782_s13 = sadd.s32 14, %s3242_s16  ;;  %vm687_vm2 = vcmp.eq.s32.totalorder %v3283_v36, %v3297_v43  ;;  %v957_v55 = vld [vmem:[#allocation6 + $0x68] sm:$0xff]  ;;  %v956_v58 = vld [vmem:[#allocation6 + $0x60] sm:$0xff]  ;;  %v958_v59 = vld [vmem:[#allocation6 + $0x70] sm:$0xff]  ;;  %v737_v5 = vstv %s3275_s5 }
  0x8d   : > { %1072 = vmatpush1.msra.mxu0 %v968_v32  ;;  %2307 = vmatpush3.msra.mxu1 %v970_v33  ;;  %s3321_s30 = sld [smem:[#allocation2 + %s774_s14]]  ;;  %s4144_s23 = sadd.s32 64, %s3260_s28  ;;  %vm695_vm3 = vcmp.eq.s32.totalorder %v3283_v36, %v3307_v47  ;;  %vm681_vm4 = vmor %vm3315_vm0, %vm679_vm1  ;;  %v954_v61 = vld [vmem:[#allocation6 + $0x50] sm:$0xff]  ;;  %v1003_v62 = vld [vmem:[#allocation6 + $0x1d8] sm:$0xff]  ;;  %vm3421_vm1 = vcmp.eq.s32.totalorder %v3283_v36, %v737_v5 }
  0x8e   : > { %1073 = vmatprep.subr.mxu0 %v966_v34  ;;  %2308 = vmatprep.subr.mxu1 %v1015_v35  ;;  %v3329_v54 = vstv %s4144_s23  ;;  %s742_s7 = sadd.s32 64, %s3280_s29  ;;  %s3332_s26 = sld [smem:[#allocation2 + %s782_s13]]  ;;  %vm689_vm6 = vmor %vm681_vm4, %vm687_vm2  ;;  %v953_v0 = vld [vmem:[#allocation6 + $0x48] sm:$0xff]  ;;  %v955_v1 = vld [vmem:[#allocation6 + $0x58] sm:$0xff] }
  0x8f   : > { %1074 = vmatpush1.msra.mxu0 %v965_v37  ;;  %2309 = vmatpush3.msra.mxu1 %v967_v38  ;;  %s4145_s14 = sadd.s32 128, %s3264_s24  ;;  %s750_s9 = sadd.s32 128, %s3286_s17  ;;  %vm711_vm8 = vcmp.eq.s32.totalorder %v3283_v36, %v3329_v54  ;;  %vm697_vm9 = vmor %vm689_vm6, %vm695_vm3  ;;  %v951_v2 = vld [vmem:[#allocation6 + $0x38] sm:$0xff]  ;;  %v1000_v3 = vld [vmem:[#allocation6 + $0x1c0] sm:$0xff]  ;;  %v3388_v6 = vstv %s742_s7 }
  0x90   : > { %1075 = vmatprep.subr.mxu0 %v963_v41  ;;  %2310 = vmatprep.subr.mxu1 %v1012_v42  ;;  %v3338_v57 = vstv %s4145_s14  ;;  %s790_s28 = sadd.s32 15, %s3242_s16  ;;  %s4146_s13 = sadd.s32 192, %s3272_s18  ;;  %vm3379_vm11 = vmand %vm698_vm5, %vm697_vm9  ;;  %v950_v7 = vld [vmem:[#allocation6 + $0x30] sm:$0xff]  ;;  %v952_v8 = vld [vmem:[#allocation6 + $0x40] sm:$0xff]  ;;  %v3401_v9 = vstv %s750_s9  ;;  %vm745_vm2 = vcmp.eq.s32.totalorder %v3283_v36, %v3388_v6  ;;  %vm764_vm9 = vcmp.eq.s32.totalorder %v3303_v46, 2 }
  0x91   : > { %1076 = vmatpush1.msra.mxu0 %v962_v44  ;;  %2311 = vmatpush3.msra.mxu1 %v964_v45  ;;  %v3350_v60 = vstv %s4146_s13  ;;  %s3352_s24 = sld [smem:[#allocation2 + %s790_s28]]  ;;  %s803_s23 = sadd.s32 16, %s3242_s16  ;;  %vm719_vm10 = vcmp.eq.s32.totalorder %v3283_v36, %v3338_v57  ;;  %vm713_vm13 = vmor %vm3361_vm7, %vm711_vm8  ;;  %v948_v10 = vld [vmem:[#allocation6 + $0x20] sm:$0xff]  ;;  %v997_v11 = vld [vmem:[#allocation6 + $0x1a8] sm:$0xff]  ;;  %vm753_vm4 = vcmp.eq.s32.totalorder %v3283_v36, %v3401_v9  ;;  %v771_v21 = vstv %s3309_s20 }
  0x92   : > { %1077 = vmatprep.subr.mxu0 %v960_v48  ;;  %2312 = vmatprep.subr.mxu1 %v1009_v49  ;;  %s3368_s14 = sld [smem:[#allocation2 + %s803_s23]]  ;;  %s808_s28 = sadd.s32 17, %s3242_s16  ;;  %vm727_vm12 = vcmp.eq.s32.totalorder %v3283_v36, %v3350_v60  ;;  %vm721_vm15 = vmor %vm713_vm13, %vm719_vm10  ;;  %v947_v13 = vld [vmem:[#allocation6 + $0x18] sm:$0xff]  ;;  %v949_v14 = vld [vmem:[#allocation6 + $0x28] sm:$0xff]  ;;  %vm3483_vm13 = vcmp.eq.s32.totalorder %v3283_v36, %v771_v21 }
  0x93   : > { %1078 = vmatpush1.msra.mxu0 %v959_v51  ;;  %2313 = vmatpush3.msra.mxu1 %v961_v52  ;;  %s816_s13 = sadd.s32 18, %s3242_s16  ;;  %s3391_s18 = sld [smem:[#allocation2 + %s808_s28]]  ;;  %vm729_vm0 = vmor %vm721_vm15, %vm727_vm12  ;;  %v945_v16 = vld [vmem:[#allocation6 + $0x8] sm:$0xff]  ;;  %v994_v17 = vld [vmem:[#allocation6 + $0x190] sm:$0xff] }
  0x94   : > { %1079 = vmatprep.subr.mxu0 %v957_v55  ;;  %2314 = vmatprep.subr.mxu1 %v1006_v56  ;;  %s784_s29 = sadd.s32 128, %s3332_s26  ;;  %s3404_s7 = sld [smem:[#allocation2 + %s816_s13]]  ;;  %vm3432_vm3 = vmand %vm730_vm14, %vm729_vm0  ;;  %v944_v19 = vld [vmem:[#allocation6] sm:$0xff]  ;;  %v946_v20 = vld [vmem:[#allocation6 + $0x10] sm:$0xff] }
  0x95   : > { %1080 = vmatpush1.msra.mxu0 %v956_v58  ;;  %2315 = vmatpush3.msra.mxu1 %v958_v59  ;;  %s4151_s28 = sadd.s32 192, %s3300_s27  ;;  %s824_s23 = sadd.s32 19, %s3242_s16  ;;  %vm734_vm6 = vmor %vm3379_vm11, %vm3432_vm3  ;;  %v1038_v23 = vld [vmem:[#allocation6 + $0x2f0] sm:$0xff]  ;;  %v3463_v24 = vstv %s784_s29  ;;  %v1037_v28 = vld [vmem:[#allocation6 + $0x2e8] sm:$0xff]  ;;  %vm4100_vm3 = vcmp.eq.s32.totalorder %v3303_v46, 3 }
  0x96   : > { %1081 = vmatprep.subr.mxu0 %v954_v61  ;;  %2316 = vmatprep.subr.mxu1 %v1003_v62  ;;  %v3411_v12 = vstv %s4151_s28  ;;  %s837_s17 = sadd.s32 20, %s3242_s16  ;;  %s3428_s9 = sld [smem:[#allocation2 + %s824_s23]]  ;;  %vm747_vm8 = vmor %vm3421_vm1, %vm745_vm2  ;;  %v1244_v25 = vld [vmem:[#allocation7 + $0x170] sm:$0xff]  ;;  %v1035_v30 = vld [vmem:[#allocation6 + $0x2d8] sm:$0xff]  ;;  %vm787_vm1 = vcmp.eq.s32.totalorder %v3283_v36, %v3463_v24 }
  0x97   : > { %1082 = vmatpush1.msra.mxu0 %v953_v0  ;;  %2317 = vmatpush3.msra.mxu1 %v955_v1  ;;  %s3438_s13 = sld [smem:[#allocation2 + %s837_s17]]  ;;  %s842_s28 = sadd.s32 21, %s3242_s16  ;;  %vm761_vm7 = vcmp.eq.s32.totalorder %v3283_v36, %v3411_v12  ;;  %vm755_vm10 = vmor %vm747_vm8, %vm753_vm4  ;;  %v1034_v31 = vld [vmem:[#allocation6 + $0x2d0] sm:$0xff]  ;;  %v1032_v35 = vld [vmem:[#allocation6 + $0x2c0] sm:$0xff] }
  0x98   : > { %1083 = vmatprep.subr.mxu0 %v951_v2  ;;  %2318 = vmatprep.subr.mxu1 %v1000_v3  ;;  %s4156_s23 = sadd.s32 64, %s3321_s30  ;;  %s3452_s17 = sld [smem:[#allocation2 + %s842_s28]]  ;;  %vm763_vm12 = vmor %vm755_vm10, %vm761_vm7  ;;  %v805_v33 = vstv %s3368_s14  ;;  %v1031_v38 = vld [vmem:[#allocation6 + $0x2b8] sm:$0xff]  ;;  %v1029_v42 = vld [vmem:[#allocation6 + $0x2a8] sm:$0xff] }
  0x99   : > { %1084 = vmatpush1.msra.mxu0 %v950_v7  ;;  %2319 = vmatpush3.msra.mxu1 %v952_v8  ;;  %v3450_v22 = vstv %s4156_s23  ;;  %s850_s27 = sadd.s32 22, %s3242_s16  ;;  %s810_s30 = sadd.s32 64, %s3391_s18  ;;  %vm766_vm0 = vmand %vm764_vm9, %vm763_vm12  ;;  %vm3540_vm8 = vcmp.eq.s32.totalorder %v3283_v36, %v805_v33  ;;  %v1028_v45 = vld [vmem:[#allocation6 + $0x2a0] sm:$0xff]  ;;  %v1026_v49 = vld [vmem:[#allocation6 + $0x290] sm:$0xff] }
  0x9a   : > { %1085 = vmatprep.subr.mxu0 %v948_v10  ;;  %2320 = vmatprep.subr.mxu1 %v997_v11  ;;  %s3466_s28 = sld [smem:[#allocation2 + %s850_s27]]  ;;  %s4157_s23 = sadd.s32 192, %s3352_s24  ;;  %vm779_vm15 = vcmp.eq.s32.totalorder %v3283_v36, %v3450_v22  ;;  %vm3504_vm2 = vmor %vm734_vm6, %vm766_vm0  ;;  %v3511_v34 = vstv %s810_s30  ;;  %v1025_v52 = vld [vmem:[#allocation6 + $0x288] sm:$0xff]  ;;  %v1023_v56 = vld [vmem:[#allocation6 + $0x278] sm:$0xff] }
  0x9b   : > { %1086 = vmatpush1.msra.mxu0 %v947_v13  ;;  %2321 = vmatpush3.msra.mxu1 %v949_v14  ;;  %v3473_v26 = vstv %s4157_s23  ;;  %s818_s0 = sadd.s32 128, %s3404_s7  ;;  %s858_s15 = sadd.s32 23, %s3242_s16  ;;  %vm781_vm11 = vmor %vm3483_vm13, %vm779_vm15  ;;  %vm813_vm10 = vcmp.eq.s32.totalorder %v3283_v36, %v3511_v34  ;;  %v1022_v59 = vld [vmem:[#allocation6 + $0x270] sm:$0xff]  ;;  %v1020_v62 = vld [vmem:[#allocation6 + $0x260] sm:$0xff] }
  0x9c   : > { %1087 = vmatprep.subr.mxu0 %v945_v16  ;;  %2322 = vmatprep.subr.mxu1 %v994_v17  ;;  %s3489_s26 = sld [smem:[#allocation2 + %s858_s15]]  ;;  %s871_s24 = sadd.s32 24, %s3242_s16  ;;  %vm795_vm4 = vcmp.eq.s32.totalorder %v3283_v36, %v3473_v26  ;;  %v3521_v37 = vstv %s818_s0  ;;  %vm789_vm6 = vmor %vm781_vm11, %vm787_vm1  ;;  %v1019_v63 = vld [vmem:[#allocation6 + $0x258] sm:$0xff]  ;;  %v1017_v3 = vld [vmem:[#allocation6 + $0x248] sm:$0xff] }
  0x9d   : > { %1088 = vmatpush1.msra.mxu0 %v944_v19  ;;  %2323 = vmatpush3.msra.mxu1 %v946_v20  ;;  %s826_s18 = sadd.s32 192, %s3428_s9  ;;  %s3497_s29 = sld [smem:[#allocation2 + %s871_s24]]  ;;  %vm797_vm7 = vmor %vm789_vm6, %vm795_vm4  ;;  %vm821_vm13 = vcmp.eq.s32.totalorder %v3283_v36, %v3521_v37  ;;  %v839_v50 = vstv %s3438_s13  ;;  %vm4098_vm4 = vcmp.eq.s32.totalorder %v3303_v46, 4  ;;  %v1016_v7 = vld [vmem:[#allocation6 + $0x240] sm:$0xff]  ;;  %v1014_v10 = vld [vmem:[#allocation6 + $0x230] sm:$0xff] }
  0x9e   : > { %1089 = vmatprep.subr.mxu0 %v1038_v23  ;;  %1246 = vmatprep.subr.mxu1 %v1244_v25  ;;  %s876_s15 = sadd.s32 25, %s3242_s16  ;;  %s884_s7 = sadd.s32 26, %s3242_s16  ;;  %v3529_v41 = vstv %s826_s18  ;;  %vm3550_vm12 = vmand %vm4100_vm3, %vm797_vm7  ;;  %vm3596_vm7 = vcmp.eq.s32.totalorder %v3283_v36, %v839_v50  ;;  %v1013_v13 = vld [vmem:[#allocation6 + $0x228] sm:$0xff]  ;;  %v1011_v15 = vld [vmem:[#allocation6 + $0x218] sm:$0xff] }
  0x9f   : > { %1090 = vmatpush2.msra.mxu0 %v1037_v28  ;;  %s844_s27 = sadd.s32 64, %s3452_s17  ;;  %s3524_s9 = sld [smem:[#allocation2 + %s876_s15]]  ;;  %vm802_vm15 = vmor %vm3504_vm2, %vm3550_vm12  ;;  %vm829_vm0 = vcmp.eq.s32.totalorder %v3283_v36, %v3529_v41  ;;  %vm4097_vm12 = vcmp.eq.s32.totalorder %v3303_v46, 5  ;;  %v1010_v18 = vld [vmem:[#allocation6 + $0x210] sm:$0xff]  ;;  %v1008_v20 = vld [vmem:[#allocation6 + $0x200] sm:$0xff] }
  0xa0   : > { %1091 = vmatprep.subr.mxu0 %v1035_v30  ;;  %s852_s30 = sadd.s32 128, %s3466_s28  ;;  %s3532_s23 = sld [smem:[#allocation2 + %s884_s7]]  ;;  %v3566_v51 = vstv %s844_s27  ;;  %vm815_vm1 = vmor %vm3540_vm8, %vm813_vm10  ;;  %v1007_v25 = vld [vmem:[#allocation6 + $0x1f8] sm:$0xff]  ;;  %v1005_v28 = vld [vmem:[#allocation6 + $0x1e8] sm:$0xff] }
  0xa1   : > { %1092 = vmatpush2.msra.mxu0 %v1034_v31  ;;  %s892_s0 = sadd.s32 27, %s3242_s16  ;;  %s905_s17 = sadd.s32 28, %s3242_s16  ;;  %v3577_v55 = vstv %s852_s30  ;;  %vm823_vm11 = vmor %vm815_vm1, %vm821_vm13  ;;  %vm847_vm8 = vcmp.eq.s32.totalorder %v3283_v36, %v3566_v51  ;;  %v1004_v29 = vld [vmem:[#allocation6 + $0x1e0] sm:$0xff]  ;;  %v1002_v31 = vld [vmem:[#allocation6 + $0x1d0] sm:$0xff] }
  0xa2   : > { %1093 = vmatprep.subr.mxu0 %v1032_v35  ;;  %s860_s28 = sadd.s32 192, %s3489_s26  ;;  %s3557_s24 = sld [smem:[#allocation2 + %s892_s0]]  ;;  %vm831_vm6 = vmor %vm823_vm11, %vm829_vm0  ;;  %vm855_vm13 = vcmp.eq.s32.totalorder %v3283_v36, %v3577_v55  ;;  %v1001_v32 = vld [vmem:[#allocation6 + $0x1c8] sm:$0xff]  ;;  %v999_v35 = vld [vmem:[#allocation6 + $0x1b8] sm:$0xff] }
  0xa3   : > { %1094 = vmatpush2.msra.mxu0 %v1031_v38  ;;  %s3568_s18 = sld [smem:[#allocation2 + %s905_s17]]  ;;  %s910_s26 = sadd.s32 29, %s3242_s16  ;;  %v3585_v58 = vstv %s860_s28  ;;  %vm834_vm10 = vmand %vm4098_vm4, %vm831_vm6  ;;  %v873_v1 = vstv %s3497_s29  ;;  %v998_v38 = vld [vmem:[#allocation6 + $0x1b0] sm:$0xff]  ;;  %v993_v44 = vld [vmem:[#allocation6 + $0x188] sm:$0xff] }
  0xa4   : > { %1095 = vmatprep.subr.mxu0 %v1029_v42  ;;  %s3579_s15 = sld [smem:[#allocation2 + %s910_s26]]  ;;  %s918_s7 = sadd.s32 30, %s3242_s16  ;;  %vm3615_vm0 = vmor %vm802_vm15, %vm834_vm10  ;;  %vm863_vm1 = vcmp.eq.s32.totalorder %v3283_v36, %v3585_v58  ;;  %vm3645_vm6 = vcmp.eq.s32.totalorder %v3283_v36, %v873_v1  ;;  %v1228_v48 = vld [vmem:[#allocation7 + $0xf0] sm:$0xff]  ;;  %v1219_v61 = vld [vmem:[#allocation7 + $0xa8] sm:$0xff] }
  0xa5   : > { %1096 = vmatpush2.msra.mxu0 %v1028_v45  ;;  %s878_s27 = sadd.s32 64, %s3524_s9  ;;  %s3588_s0 = sld [smem:[#allocation2 + %s918_s7]]  ;;  %vm849_vm2 = vmor %vm3596_vm7, %vm847_vm8  ;;  %v1233_v45 = vld [vmem:[#allocation7 + $0x118] sm:$0xff]  ;;  %v1216_v0 = vld [vmem:[#allocation7 + $0x90] sm:$0xff] }
  0xa6   : > { %1097 = vmatprep.subr.mxu0 %v1026_v49  ;;  %s886_s9 = sadd.s32 128, %s3532_s23  ;;  %s926_s30 = sadd.s32 31, %s3242_s16  ;;  %v3622_v2 = vstv %s878_s27  ;;  %vm857_vm15 = vmor %vm849_vm2, %vm855_vm13  ;;  %v1226_v49 = vld [vmem:[#allocation7 + $0xe0] sm:$0xff]  ;;  %v1212_v11 = vld [vmem:[#allocation7 + $0x70] sm:$0xff] }
  0xa7   : > { %1098 = vmatpush2.msra.mxu0 %v1025_v52  ;;  %s3608_s17 = sld [smem:[#allocation2 + %s926_s30]]  ;;  %v3631_v4 = vstv %s886_s9  ;;  %vm865_vm11 = vmor %vm857_vm15, %vm863_vm1  ;;  %vm881_vm7 = vcmp.eq.s32.totalorder %v3283_v36, %v3622_v2  ;;  %vm4099_vm15 = vcmp.eq.s32.totalorder %v3303_v46, 6  ;;  %v1223_v52 = vld [vmem:[#allocation7 + $0xc8] sm:$0xff]  ;;  %v1205_v14 = vld [vmem:[#allocation7 + $0x38] sm:$0xff]  ;;  %s3013_s27 = smov [#allocation13]  }
  0xa8   : > { %1099 = vmatprep.subr.mxu0 %v1023_v56  ;;  %s894_s16 = sadd.s32 192, %s3557_s24  ;;  %vm3654_vm8 = vmand %vm4097_vm12, %vm865_vm11  ;;  %vm889_vm10 = vcmp.eq.s32.totalorder %v3283_v36, %v3631_v4  ;;  %v1222_v56 = vld [vmem:[#allocation7 + $0xc0] sm:$0xff]  ;;  %v1431_v30 = vld [vmem:[#allocation9 + $0x78] sm:$0xff]  ;;  %s4189_s26 = sld [smem:[#allocation33_spill]] }
  0xa9   : > { %1100 = vmatpush2.msra.mxu0 %v1022_v59  ;;  %v3636_v8 = vstv %s894_s16  ;;  %vm870_vm13 = vmor %vm3615_vm0, %vm3654_vm8  ;;  %v907_v16 = vstv %s3568_s18  ;;  %vm678_vm0 = vcmp.eq.s32.totalorder %v3269_v27, %v3291_v40  ;;  %v3011_v40 = vmov 0.0   ;;  %v1224_v59 = vld [vmem:[#allocation7 + $0xd0] sm:$0xff]  ;;  %s3833_s5 = scalar_select %p645_p0, %s3120_s25, 1 }
  0xaa   : > { %1101 = vmatprep.subr.mxu0 %v1020_v62  ;;  %s912_s23 = sadd.s32 64, %s3579_s15  ;;  %vm897_vm1 = vcmp.eq.s32.totalorder %v3283_v36, %v3636_v8  ;;  %vm883_vm2 = vmor %vm3645_vm6, %vm881_vm7  ;;  %vm909_vm6 = vcmp.eq.s32.totalorder %v3283_v36, %v907_v16  ;;  %v1217_v62 = vld [vmem:[#allocation7 + $0x98] sm:$0xff] }
  0xab   : > { %1102 = vmatpush2.msra.mxu0 %v1019_v63  ;;  %s920_s28 = sadd.s32 128, %s3588_s0  ;;  %v3667_v17 = vstv %s912_s23  ;;  %vm891_vm11 = vmor %vm883_vm2, %vm889_vm10  ;;  %v1221_v63 = vld [vmem:[#allocation7 + $0xb8] sm:$0xff]  ;;  %s2261_s21 = sshll.u32 %s3833_s5, 3 }
  0xac   : > { %1103 = vmatprep.subr.mxu0 %v1017_v3  ;;  %v3676_v19 = vstv %s920_s28  ;;  %vm899_vm12 = vmor %vm891_vm11, %vm897_vm1  ;;  %vm915_vm7 = vcmp.eq.s32.totalorder %v3283_v36, %v3667_v17  ;;  %vm4101_vm11 = vcmp.eq.s32.totalorder %v3303_v46, 7  ;;  %v1213_v3 = vld [vmem:[#allocation7 + $0x78] sm:$0xff]  ;;  %s648_s14 = scalar_lea.vmem %s4067_s1, %s2261_s21  ;;  %s3933_s20 = sshll.u32 %s3833_s5, 6 }
  0xad   : > { %1104 = vmatpush2.msra.mxu0 %v1016_v7  ;;  %s928_s24 = sadd.s32 192, %s3608_s17  ;;  %vm902_vm4 = vmand %vm4099_vm15, %vm899_vm12  ;;  %vm923_vm10 = vcmp.eq.s32.totalorder %v3283_v36, %v3676_v19  ;;  %v1215_v7 = vld [vmem:[#allocation7 + $0x88] sm:$0xff]  ;;  %s653_s29 = scalar_lea.vmem %s4068_s2, %s3933_s20 }
  0xae   : > { %1105 = vmatprep.subr.mxu0 %v1014_v10  ;;  %v3681_v23 = vstv %s928_s24  ;;  %vm3700_vm1 = vmor %vm870_vm13, %vm902_vm4  ;;  %vm672_vm4 = vcmp.eq.s32.totalorder %v3269_v27, %v671_v39  ;;  %vm686_vm13 = vcmp.eq.s32.totalorder %v3269_v27, %v3297_v43  ;;  %v995_v39 = vld [vmem:[#allocation6 + $0x198] sm:$0xff]  ;;  %v992_v43 = vld [vmem:[#allocation6 + $0x180] sm:$0xff]  ;;  %s3973_s0 = scalar_lea.vmem %s4070_s4, %s3933_s20  ;;  %s658_s17 = scalar_lea.vmem %s4069_s3, %s3933_s20 }
  0xaf   : > { %1106 = vmatpush2.msra.mxu0 %v1013_v13  ;;  %vm931_vm2 = vcmp.eq.s32.totalorder %v3283_v36, %v3681_v23  ;;  %vm917_vm12 = vmor %vm909_vm6, %vm915_vm7  ;;  %v996_v36 = vld [vmem:[#allocation6 + $0x1a0] sm:$0xff]  ;;  %vm694_vm6 = vcmp.eq.s32.totalorder %v3269_v27, %v3307_v47  ;;  %v1208_v10 = vld [vmem:[#allocation7 + $0x50] sm:$0xff]  ;;  %s4187_s28 = sld [smem:[#allocation32_spill]]  ;;  %s642_s21 = sand.u32 1, %s2991_s22  }
  0xb0   : > { %1107 = vmatprep.subr.mxu0 %v1011_v15  ;;  %vm925_vm15 = vmor %vm917_vm12, %vm923_vm10  ;;  %vm704_vm10 = vcmp.eq.s32.totalorder %v3269_v27, %v703_v53  ;;  %vm718_vm12 = vcmp.eq.s32.totalorder %v3269_v27, %v3338_v57  ;;  %v1243_v57 = vld [vmem:[#allocation7 + $0x168] sm:$0xff]  ;;  %v1209_v15 = vld [vmem:[#allocation7 + $0x58] sm:$0xff]  ;;  %s2260_s19 = sshll.u32 %s642_s21, 3  ;;  %s2286_s20 = sshll.u32 %s3120_s25, 7 }
  0xb1   : > { %1108 = vmatpush2.msra.mxu0 %v1010_v18  ;;  %vm933_vm3 = vmor %vm925_vm15, %vm931_vm2  ;;  %v1207_v13 = vld [vmem:[#allocation7 + $0x48] sm:$0xff]  ;;  %v1206_v18 = vld [vmem:[#allocation7 + $0x40] sm:$0xff]  ;;  %s4031_s5 = scalar_lea.hbm %s4189_s26, %s2286_s20  ;;  %s2074_s15 = scalar_lea.sflag [#allocation4], %s642_s21 }
  0xb2   : > { %1109 = vmatprep.subr.mxu0 %v1008_v20  ;;  %vm936_vm8 = vmand %vm4101_vm11, %vm933_vm3  ;;  %v1199_v20 = vld [vmem:[#allocation7 + $0x8] sm:$0xff]  ;;  %v1420_v53 = vld [vmem:[#allocation9 + $0x20] sm:$0xff] }
  0xb3   : > { %1110 = vmatpush2.msra.mxu0 %v1007_v25  ;;  %vm938_vm15 = vmor %vm3700_vm1, %vm936_vm8  ;;  %vm710_vm1 = vcmp.eq.s32.totalorder %v3269_v27, %v3329_v54  ;;  %v1198_v25 = vld [vmem:[#allocation7] sm:$0xff]  ;;  %v1421_v47 = vld [vmem:[#allocation9 + $0x28] sm:$0xff] }
  0xb4   : > { %1111 = vmatprep.subr.mxu0 %v1005_v28  ;;  %v2270_v42 = vsel %vm938_vm15, 1.0, %v3011_v40  ;;  %vm680_vm7 = vmor %vm672_vm4, %vm678_vm0  ;;  %vm726_vm0 = vcmp.eq.s32.totalorder %v3269_v27, %v3350_v60  ;;  %v3844_v28 = vld [vmem:[%s648_s14] sm:$0xff]  ;;  %v1419_v54 = vld [vmem:[#allocation9 + $0x18] sm:$0xff]  ;;  %s644_s14 = scalar_lea.vmem [#allocation13], %s2260_s19 }
  0xb5   : > { %1112 = vmatpush2.msra.mxu0 %v1004_v29  ;;  %1192 = vmatprep.mubr.f32.mxu1 %v2270_v42  ;;  %vm688_vm3 = vmor %vm680_vm7, %vm686_vm13  ;;  %v1200_v29 = vld [vmem:[#allocation7 + $0x10] sm:$0xff]  ;;  %s2087_s13 = sshll.u32 %s644_s14, 4  ;;  %s2088_s13 = int_to_ptr.vmem [resolvable:$true] %s2087_s13 }
  0xb6   : > { %1113 = vmatprep.subr.mxu0 %v1002_v31  ;;  %vm696_vm2 = vmor %vm688_vm3, %vm694_vm6  ;;  %1121 = vmatprep.mubr.f32.mxu0 %v2270_v42  ;;  %vm738_vm6 = vcmp.eq.s32.totalorder %v3269_v27, %v737_v5  ;;  %vm752_vm3 = vcmp.eq.s32.totalorder %v3269_v27, %v3401_v9  ;;  %v1241_v5 = vld [vmem:[#allocation7 + $0x158] sm:$0xff]  ;;  %v1240_v9 = vld [vmem:[#allocation7 + $0x150] sm:$0xff]  ;;  %s2923_s7 = scalar_lea.vmem %s2088_s13, 128 }
  0xb7   : > { %1114 = vmatpush2.msra.mxu0 %v1001_v32  ;;  %vm3730_vm4 = vmand %vm698_vm5, %vm696_vm2  ;;  %vm744_vm5 = vcmp.eq.s32.totalorder %v3269_v27, %v3388_v6  ;;  %v1245_v6 = vld [vmem:[#allocation7 + $0x178] sm:$0xff]  ;;  %v1430_v31 = vld [vmem:[#allocation9 + $0x70] sm:$0xff]  ;;  %p2924_p1 = scmp.ne.s32.totalorder %s2088_s13, %s2923_s7 }
  0xb8   : > { %1115 = vmatprep.subr.mxu0 %v999_v35  ;;  %vm712_vm8 = vmor %vm704_vm10, %vm710_vm1  ;;  %vm760_vm1 = vcmp.eq.s32.totalorder %v3269_v27, %v3411_v12  ;;  %v1238_v12 = vld [vmem:[#allocation7 + $0x140] sm:$0xff]  ;;  %v1429_v32 = vld [vmem:[#allocation9 + $0x68] sm:$0xff] }
  0xb9   : > { %1116 = vmatpush2.msra.mxu0 %v998_v38  ;;  %vm720_vm13 = vmor %vm712_vm8, %vm718_vm12  ;;  %vm772_vm8 = vcmp.eq.s32.totalorder %v3269_v27, %v771_v21  ;;  %v1237_v21 = vld [vmem:[#allocation7 + $0x138] sm:$0xff]  ;;  %v1428_v35 = vld [vmem:[#allocation9 + $0x60] sm:$0xff]  ;;  %p2925_p3 = pnand %p2924_p1, %p3137_p5 }
  0xba   : > { %1117 = vmatprep.subr.mxu0 %v996_v36  ;;  %vm728_vm15 = vmor %vm720_vm13, %vm726_vm0  ;;  %vm778_vm13 = vcmp.eq.s32.totalorder %v3269_v27, %v3450_v22  ;;  %v1235_v22 = vld [vmem:[#allocation7 + $0x128] sm:$0xff]  ;;  %v1427_v38 = vld [vmem:[#allocation9 + $0x58] sm:$0xff] }
  0xbb   : > { %1118 = vmatpush2.msra.mxu0 %v995_v39  ;;  %vm731_vm7 = vmand %vm730_vm14, %vm728_vm15  ;;  %vm786_vm15 = vcmp.eq.s32.totalorder %v3269_v27, %v3463_v24  ;;  %v1239_v24 = vld [vmem:[#allocation7 + $0x148] sm:$0xff]  ;;  %v1426_v36 = vld [vmem:[#allocation9 + $0x50] sm:$0xff]  ;;  %p2926_p4 = pneg %p2925_p3 }
  0xbc   : > { %1119 = vmatprep.subr.mxu0 %v993_v44  ;;  %vm733_vm10 = vmor %vm3730_vm4, %vm731_vm7  ;;  %v1425_v39 = vld [vmem:[#allocation9 + $0x48] sm:$0xff]  ;;  %v1424_v42 = vld [vmem:[#allocation9 + $0x40] sm:$0xff] }
  0xbd   : > { %1120 = vmatpush2.msra.mxu0 %v992_v43  ;;  %vm746_vm2 = vmor %vm738_vm6, %vm744_vm5  ;;  %vm794_vm6 = vcmp.eq.s32.totalorder %v3269_v27, %v3473_v26  ;;  %v1234_v26 = vld [vmem:[#allocation7 + $0x120] sm:$0xff]  ;;  %v1423_v44 = vld [vmem:[#allocation9 + $0x38] sm:$0xff] }
  0xbe   : > { %2428 = vmatprep.subr.mxu0 %v3011_v40  ;;  %vm754_vm12 = vmor %vm746_vm2, %vm752_vm3  ;;  %vm4180_vm2 = vcmp.eq.s32.totalorder %v3303_v46, 3  ;;  %v1422_v43 = vld [vmem:[#allocation9 + $0x30] sm:$0xff] }
  0xbf   : > { %vm762_vm0 = vmor %vm754_vm12, %vm760_vm1  ;;  %vm806_vm1 = vcmp.eq.s32.totalorder %v3269_v27, %v805_v33  ;;  %v1232_v33 = vld [vmem:[#allocation7 + $0x110] sm:$0xff] }
  0xc0   : > { %vm765_vm14 = vmand %vm764_vm9, %vm762_vm0  ;;  %vm812_vm9 = vcmp.eq.s32.totalorder %v3269_v27, %v3511_v34  ;;  %v1236_v34 = vld [vmem:[#allocation7 + $0x130] sm:$0xff] }
  0xc1   : > { %vm3759_vm4 = vmor %vm733_vm10, %vm765_vm14  ;;  %vm820_vm10 = vcmp.eq.s32.totalorder %v3269_v27, %v3521_v37  ;;  %v1231_v37 = vld [vmem:[#allocation7 + $0x108] sm:$0xff] }
  0xc2   : > { %vm780_vm5 = vmor %vm772_vm8, %vm778_vm13  ;;  %vm828_vm8 = vcmp.eq.s32.totalorder %v3269_v27, %v3529_v41  ;;  %v1229_v41 = vld [vmem:[#allocation7 + $0xf8] sm:$0xff] }
  0xc3   : > { %vm788_vm7 = vmor %vm780_vm5, %vm786_vm15  ;;  %vm846_vm5 = vcmp.eq.s32.totalorder %v3269_v27, %v3566_v51  ;;  %v1225_v51 = vld [vmem:[#allocation7 + $0xd8] sm:$0xff] }
  0xc4   : > { %vm796_vm3 = vmor %vm788_vm7, %vm794_vm6  ;;  %vm840_vm6 = vcmp.eq.s32.totalorder %v3269_v27, %v839_v50  ;;  %vm4181_vm7 = vcmp.eq.s32.totalorder %v3303_v46, 4  ;;  %v1230_v50 = vld [vmem:[#allocation7 + $0x100] sm:$0xff] }
  0xc5   : > { %vm799_vm12 = vmand %vm4180_vm2, %vm796_vm3  ;;  %vm854_vm2 = vcmp.eq.s32.totalorder %v3269_v27, %v3577_v55  ;;  %v1227_v55 = vld [vmem:[#allocation7 + $0xe8] sm:$0xff] }
  0xc6   : > { %vm801_vm0 = vmor %vm3759_vm4, %vm799_vm12 }
  0xc7   : > { %vm814_vm13 = vmor %vm806_vm1, %vm812_vm9  ;;  %vm862_vm1 = vcmp.eq.s32.totalorder %v3269_v27, %v3585_v58  ;;  %v1220_v58 = vld [vmem:[#allocation7 + $0xb0] sm:$0xff] }
  0xc8   : > { %vm822_vm14 = vmor %vm814_vm13, %vm820_vm10  ;;  %vm880_vm13 = vcmp.eq.s32.totalorder %v3269_v27, %v3622_v2  ;;  %v1218_v2 = vld [vmem:[#allocation7 + $0xa0] sm:$0xff] }
  0xc9   : > { %vm830_vm15 = vmor %vm822_vm14, %vm828_vm8  ;;  %vm874_vm8 = vcmp.eq.s32.totalorder %v3269_v27, %v873_v1  ;;  %vm4184_vm14 = vcmp.eq.s32.totalorder %v3303_v46, 5  ;;  %v1214_v1 = vld [vmem:[#allocation7 + $0x80] sm:$0xff] }
  0xca   : > { %vm833_vm3 = vmand %vm4181_vm7, %vm830_vm15 }
  0xcb   : > { %vm3787_vm4 = vmor %vm801_vm0, %vm833_vm3  ;;  %vm888_vm0 = vcmp.eq.s32.totalorder %v3269_v27, %v3631_v4  ;;  %v1211_v4 = vld [vmem:[#allocation7 + $0x68] sm:$0xff] }
  0xcc   : > { %vm848_vm9 = vmor %vm840_vm6, %vm846_vm5  ;;  %vm896_vm6 = vcmp.eq.s32.totalorder %v3269_v27, %v3636_v8  ;;  %v1210_v8 = vld [vmem:[#allocation7 + $0x60] sm:$0xff] }
  0xcd   : > { %vm856_vm12 = vmor %vm848_vm9, %vm854_vm2  ;;  %vm914_vm9 = vcmp.eq.s32.totalorder %v3269_v27, %v3667_v17  ;;  %v1202_v17 = vld [vmem:[#allocation7 + $0x20] sm:$0xff] }
  0xce   : > { %vm864_vm10 = vmor %vm856_vm12, %vm862_vm1  ;;  %vm908_vm1 = vcmp.eq.s32.totalorder %v3269_v27, %v907_v16  ;;  %vm4185_vm12 = vcmp.eq.s32.totalorder %v3303_v46, 6  ;;  %v1204_v16 = vld [vmem:[#allocation7 + $0x30] sm:$0xff] }
  0xcf   : > { %vm867_vm15 = vmand %vm4184_vm14, %vm864_vm10  ;;  %vm922_vm14 = vcmp.eq.s32.totalorder %v3269_v27, %v3676_v19  ;;  %v1201_v19 = vld [vmem:[#allocation7 + $0x18] sm:$0xff] }
  0xd0   : > { %vm869_vm7 = vmor %vm3787_vm4, %vm867_vm15  ;;  %vm930_vm4 = vcmp.eq.s32.totalorder %v3269_v27, %v3681_v23  ;;  %v1242_v27 = vld [vmem:[#allocation7 + $0x160] sm:$0xff]  ;;  %v1203_v23 = vld [vmem:[#allocation7 + $0x28] sm:$0xff] }
  0xd1   : > { %vm882_vm5 = vmor %vm874_vm8, %vm880_vm13 }
  0xd2   : > { %vm890_vm3 = vmor %vm882_vm5, %vm888_vm0  ;;  %vm4186_vm0 = vcmp.eq.s32.totalorder %v3303_v46, 7 }
  0xd3   : > { %vm898_vm2 = vmor %vm890_vm3, %vm896_vm6  ;;  %vm1654_vm3 = vcmask 31744  }
  0xd4   : > { %vm901_vm10 = vmand %vm4185_vm12, %vm898_vm2 }
  0xd5   : > { %vm903_vm11 = vmor %vm869_vm7, %vm901_vm10  ;;  %vm1759_vm7 = vcmask 1043456  }
  0xd6   : > { %vm916_vm15 = vmor %vm908_vm1, %vm914_vm9 }
  0xd7   : > { %vm924_vm8 = vmor %vm916_vm15, %vm922_vm14 }
  0xd8   : > { %vm932_vm13 = vmor %vm924_vm8, %vm930_vm4 }
  0xd9   : > { %vm935_vm6 = vmand %vm4186_vm0, %vm932_vm13 }
  0xda   : > { %vm937_vm5 = vmor %vm903_vm11, %vm935_vm6  ;;  %vm3012_vm11 = vmmov 0  }
  0xdb   : > { %v2269_v60 = vsel %vm937_vm5, 1.0, %v3011_v40 }
  0xdc   : > { %1193 = vmatmul.mubr.f32.vlgmr.msra.gmra.mxu1 %v2269_v60  ;;  %1122 = vmatmul.mubr.f32.vlgmr.msra.gmra.mxu0 %v2269_v60  ;;  %v1417_v60 = vld [vmem:[#allocation9 + $0x8] sm:$0xff] }
  0xdd   : > { %1247 = vmatpush1.msra.mxu1 %v1243_v57  ;;  %1310 = vmatprep.mubr.f32.mxu1 %v3011_v40  ;;  %v1418_v57 = vld [vmem:[#allocation9 + $0x10] sm:$0xff] }
  0xde   : > { %1248 = vmatprep.subr.mxu1 %v1241_v5  ;;  %2429 = vmatpush3.msra.mxu0 %v1245_v6  ;;  %v1416_v5 = vld [vmem:[#allocation9] sm:$0xff]  ;;  %v1548_v6 = vld [vmem:[%s4077_s11 + $0x78] sm:$0xff] }
  0xdf   : > { %1249 = vmatpush1.msra.mxu1 %v1240_v9  ;;  %2430 = vmatprep.subr.mxu0 %v3011_v40  ;;  %v1547_v9 = vld [vmem:[%s4077_s11 + $0x70] sm:$0xff] }
  0xe0   : > { %1250 = vmatprep.subr.mxu1 %v1238_v12  ;;  %2431 = vmatpush3.msra.mxu0 %v1242_v27  ;;  %v1546_v12 = vld [vmem:[%s4077_s11 + $0x68] sm:$0xff]  ;;  %v1545_v27 = vld [vmem:[%s4077_s11 + $0x60] sm:$0xff] }
  0xe1   : > { %1251 = vmatpush1.msra.mxu1 %v1237_v21  ;;  %2432 = vmatprep.subr.mxu0 %v3011_v40  ;;  %v1544_v21 = vld [vmem:[%s4077_s11 + $0x58] sm:$0xff] }
  0xe2   : > { %1252 = vmatprep.subr.mxu1 %v1235_v22  ;;  %2433 = vmatpush3.msra.mxu0 %v1239_v24  ;;  %v1543_v22 = vld [vmem:[%s4077_s11 + $0x50] sm:$0xff]  ;;  %v1044_v24 = vsub.s32 0, %v3303_v46 }
  0xe3   : > { %1253 = vmatpush1.msra.mxu1 %v1234_v26  ;;  %2434 = vmatprep.subr.mxu0 %v3011_v40  ;;  %v1040_v26 = vld [vmem:[%s4072_s6] sm:$0x7] }
  0xe4   : > { %1254 = vmatprep.subr.mxu1 %v1232_v33  ;;  %2435 = vmatpush3.msra.mxu0 %v1236_v34  ;;  %v1045_v33 = vrot.slane %v1040_v26, %v1044_v24  ;;  %v1515_v24 = vld [vmem:[%s653_s29 + $0x30] sm:$0xff] }
  0xe5   : > { %1255 = vmatpush1.msra.mxu1 %v1231_v37  ;;  %2436 = vmatprep.subr.mxu0 %v3011_v40 }
  0xe6   : > { %1256 = vmatprep.subr.mxu1 %v1229_v41  ;;  %2437 = vmatpush3.msra.mxu0 %v1233_v45  ;;  %v1048_v41 = vsub.s32 1, %v3303_v46 }
  0xe7   : > { %1257 = vmatpush1.msra.mxu1 %v1228_v48  ;;  %2438 = vmatprep.subr.mxu0 %v3011_v40 }
  0xe8   : > { %1258 = vmatprep.subr.mxu1 %v1226_v49  ;;  %2439 = vmatpush3.msra.mxu0 %v1230_v50  ;;  %v1049_v49 = vrot.slane %v1040_v26, %v1048_v41 }
  0xe9   : > { %1259 = vmatpush1.msra.mxu1 %v1225_v51  ;;  %2440 = vmatprep.subr.mxu0 %v3011_v40 }
  0xea   : > { %1260 = vmatprep.subr.mxu1 %v1223_v52  ;;  %2441 = vmatpush3.msra.mxu0 %v1227_v55 }
  0xeb   : > { %1261 = vmatpush1.msra.mxu1 %v1222_v56  ;;  %2442 = vmatprep.subr.mxu0 %v3011_v40 }
  0xec   : > { %1262 = vmatprep.subr.mxu1 %v1220_v58  ;;  %2443 = vmatpush3.msra.mxu0 %v1224_v59 }
  0xed   : > { %1263 = vmatpush1.msra.mxu1 %v1219_v61  ;;  %2444 = vmatprep.subr.mxu0 %v3011_v40 }
  0xee   : > { %1264 = vmatprep.subr.mxu1 %v1217_v62  ;;  %2445 = vmatpush3.msra.mxu0 %v1221_v63 }
  0xef   : > { %1265 = vmatpush1.msra.mxu1 %v1216_v0  ;;  %2446 = vmatprep.subr.mxu0 %v3011_v40 }
  0xf0   : > { %1266 = vmatprep.subr.mxu1 %v1214_v1  ;;  %2447 = vmatpush3.msra.mxu0 %v1218_v2  ;;  %v1052_v2 = vsub.s32 2, %v3303_v46 }
  0xf1   : > { %1267 = vmatpush1.msra.mxu1 %v1213_v3  ;;  %2448 = vmatprep.subr.mxu0 %v3011_v40 }
  0xf2   : > { %1268 = vmatprep.subr.mxu1 %v1211_v4  ;;  %2449 = vmatpush3.msra.mxu0 %v1215_v7  ;;  %v2273_v4 = vld [vmem:[%s4074_s8] ss:$0 sm:$0xff]  ;;  %v1053_v7 = vrot.slane %v1040_v26, %v1052_v2 }
  0xf3   : > { %1269 = vmatpush1.msra.mxu1 %v1210_v8  ;;  %2450 = vmatprep.subr.mxu0 %v3011_v40 }
  0xf4   : > { %1270 = vmatprep.subr.mxu1 %v1208_v10  ;;  %2451 = vmatpush3.msra.mxu0 %v1212_v11 }
  0xf5   : > { %1271 = vmatpush1.msra.mxu1 %v1207_v13  ;;  %2452 = vmatprep.subr.mxu0 %v3011_v40 }
  0xf6   : > { %1272 = vmatprep.subr.mxu1 %v1205_v14  ;;  %2453 = vmatpush3.msra.mxu0 %v1209_v15 }
  0xf7   : > { %1273 = vmatpush1.msra.mxu1 %v1204_v16  ;;  %2454 = vmatprep.subr.mxu0 %v3011_v40 }
  0xf8   : > { %1274 = vmatprep.subr.mxu1 %v1202_v17  ;;  %2455 = vmatpush3.msra.mxu0 %v1206_v18 }
  0xf9   : > { %1275 = vmatpush1.msra.mxu1 %v1201_v19  ;;  %2456 = vmatprep.subr.mxu0 %v3011_v40 }
  0xfa   : > { %1276 = vmatprep.subr.mxu1 %v1199_v20  ;;  %2457 = vmatpush3.msra.mxu0 %v1203_v23 }
  0xfb   : > { %1277 = vmatpush1.msra.mxu1 %v1198_v25  ;;  %2458 = vmatprep.subr.mxu0 %v3011_v40  ;;  %v1542_v25 = vld [vmem:[%s4077_s11 + $0x48] sm:$0xff] }
  0xfc   : > { %1311 = vmatmul.mubr.f32.vlgmr.msra.gmra.mxu1 %v3844_v28  ;;  %2459 = vmatpush3.msra.mxu0 %v1200_v29  ;;  %v1541_v29 = vld [vmem:[%s4077_s11 + $0x40] sm:$0xff] }
  0xfd   : > { %2460 = vmatprep.mubr.msk.f32.mxu0 %vm3012_vm11, %v3011_v40  ;;  %2463 = vmatprep.subr.mxu1 %v3011_v40 }
  0xfe   : > { %2461 = vmatmul.mubr.f32.vlgmr.msra.gmra.mxu0 %v3844_v28  ;;  %2495 = vmatprep.mubr.msk.f32.mxu1 %vm3012_vm11, %v3011_v40 }
  0xff   : > { %2464 = vmatpush3.msra.mxu1 %v1431_v30  ;;  %2498 = vmatprep.subr.mxu0 %v1548_v6  ;;  %v1539_v30 = vld [vmem:[%s4077_s11 + $0x30] sm:$0xff] }
 0x100   : > { %2465 = vmatprep.subr.mxu1 %v3011_v40  ;;  %2499 = vmatpush3.msra.mxu0 %v1548_v6  ;;  %v1512_v6 = vld [vmem:[%s653_s29 + $0x18] sm:$0xff] }
 0x101   : > { %2466 = vmatpush3.msra.mxu1 %v1430_v31  ;;  %2500 = vmatprep.subr.mxu0 %v1547_v9  ;;  %v1538_v31 = vld [vmem:[%s4077_s11 + $0x28] sm:$0xff] }
 0x102   : > { %2467 = vmatprep.subr.mxu1 %v3011_v40  ;;  %2501 = vmatpush3.msra.mxu0 %v1547_v9 }
 0x103   : > { %2468 = vmatpush3.msra.mxu1 %v1429_v32  ;;  %2502 = vmatprep.subr.mxu0 %v1546_v12  ;;  %v1537_v32 = vld [vmem:[%s4077_s11 + $0x20] sm:$0xff] }
 0x104   : > { %2469 = vmatprep.subr.mxu1 %v3011_v40  ;;  %2503 = vmatpush3.msra.mxu0 %v1546_v12  ;;  %v1513_v12 = vld [vmem:[%s653_s29 + $0x20] sm:$0xff] }
 0x105   : > { %2470 = vmatpush3.msra.mxu1 %v1428_v35  ;;  %2504 = vmatprep.subr.mxu0 %v1545_v27  ;;  %v1536_v35 = vld [vmem:[%s4077_s11 + $0x18] sm:$0xff] }
 0x106   : > { %2471 = vmatprep.subr.mxu1 %v3011_v40  ;;  %2505 = vmatpush3.msra.mxu0 %v1545_v27 }
 0x107   : > { %2472 = vmatpush3.msra.mxu1 %v1427_v38  ;;  %2506 = vmatprep.subr.mxu0 %v1544_v21  ;;  %v1535_v38 = vld [vmem:[%s4077_s11 + $0x10] sm:$0xff] }
 0x108   : > { %2473 = vmatprep.subr.mxu1 %v3011_v40  ;;  %2507 = vmatpush3.msra.mxu0 %v1544_v21  ;;  %v1514_v21 = vld [vmem:[%s653_s29 + $0x28] sm:$0xff] }
 0x109   : > { %2474 = vmatpush3.msra.mxu1 %v1426_v36  ;;  %2508 = vmatprep.subr.mxu0 %v1543_v22  ;;  %v1534_v36 = vld [vmem:[%s4077_s11 + $0x8] sm:$0xff] }
 0x10a   : > { %2475 = vmatprep.subr.mxu1 %v3011_v40  ;;  %2509 = vmatpush3.msra.mxu0 %v1543_v22 }
 0x10b   : > { %2476 = vmatpush3.msra.mxu1 %v1425_v39  ;;  %2510 = vmatprep.subr.mxu0 %v1542_v25  ;;  %v1533_v39 = vld [vmem:[%s4077_s11] sm:$0xff] }
 0x10c   : > { %2477 = vmatprep.subr.mxu1 %v3011_v40  ;;  %2511 = vmatpush3.msra.mxu0 %v1542_v25 }
 0x10d   : > { %2478 = vmatpush3.msra.mxu1 %v1424_v42  ;;  %2512 = vmatprep.subr.mxu0 %v1541_v29  ;;  %v2274_v42 = vld [vmem:[%s4076_s10] ss:$0 sm:$0xff] }
 0x10e   : > { %2479 = vmatprep.subr.mxu1 %v3011_v40  ;;  %2513 = vmatpush3.msra.mxu0 %v1541_v29 }
 0x10f   : > { %2480 = vmatpush3.msra.mxu1 %v1423_v44  ;;  %v1509_v44 = vld [vmem:[%s653_s29] sm:$0xff] }
 0x110   : > { %2481 = vmatprep.subr.mxu1 %v3011_v40 }
 0x111   : > { %2482 = vmatpush3.msra.mxu1 %v1422_v43  ;;  %v1510_v43 = vld [vmem:[%s653_s29 + $0x8] sm:$0xff] }
 0x112   : > { %2483 = vmatprep.subr.mxu1 %v3011_v40 }
 0x113   : > { %2484 = vmatpush3.msra.mxu1 %v1421_v47 }
 0x114   : > { %2485 = vmatprep.subr.mxu1 %v3011_v40 }
 0x115   : > { %2486 = vmatpush3.msra.mxu1 %v1420_v53  ;;  %v1511_v53 = vld [vmem:[%s653_s29 + $0x10] sm:$0xff] }
 0x116   : > { %2487 = vmatprep.subr.mxu1 %v3011_v40 }
 0x117   : > { %2488 = vmatpush3.msra.mxu1 %v1419_v54 }
 0x118   : > { %2489 = vmatprep.subr.mxu1 %v3011_v40 }
 0x119   : > { %2490 = vmatpush3.msra.mxu1 %v1418_v57 }
 0x11a   : > { %2491 = vmatprep.subr.mxu1 %v3011_v40 }
 0x11b   : > { %2492 = vmatpush3.msra.mxu1 %v1417_v60 }
 0x11c   : > { %2493 = vmatprep.subr.mxu1 %v3011_v40 }
 0x11d   : > { %2494 = vmatpush3.msra.mxu1 %v1416_v5 }
 0x19c   : > { %v2324_v34 = vpop.f32.mrf.mxu1  ;;  %v1123_v37 = vpop.f32.mrf.mxu0 }
 0x19d   : > { %v1124_v45 = vadd.f32 %v1123_v37, %v1045_v33  ;;  %v1516_v33 = vld [vmem:[%s653_s29 + $0x38] sm:$0xff] }
 0x19e   : > { %v2325_v48 = vpop.f32.mrf.mxu1  ;;  %v1125_v51 = vpop.f32.mrf.mxu0 }
 0x19f   : > { %v1126_v58 = vadd.f32 %v1125_v51, %v1049_v49  ;;  %v2326_v8 = vadd.f32 %v2325_v48, %v2324_v34 }
 0x1a1   : > { %v1195_v14 = vadd.f32 %v2326_v8, %v1053_v7 }
 0x1bc   : > { %v1312_v50 = vpop.f32.mrf.mxu1 }
 0x1bd   : > { %v1387_v52 = vadd.f32 %v1312_v50, %v1124_v45 }
 0x1be   : > { %v1383_v55 = vpop.f32.mrf.mxu0  ;;  %v1314_v61 = vpop.f32.mrf.mxu1 }
 0x1bf   : > { %v2271_v56 = vmul.f32 -1.442695, %v1387_v52  ;;  %v1388_v62 = vadd.f32 %v1314_v61, %v1126_v58  ;;  %v1408_v11 = vadd.f32 %v2273_v4, %v1383_v55  ;;  %v1906_v58 = vld [vmem:[#allocation10 + $0x78] sm:$0xff]  ;;  %v1904_v61 = vld [vmem:[#allocation10 + $0x68] sm:$0xff] }
 0x1c0   : > { %v2462_v59 = vpop.f32.mrf.mxu0 }
 0x1c1   : > { %2732 = vpow2.f32 %v2271_v56  ;;  %v2272_v63 = vmul.f32 -1.442695, %v1388_v62  ;;  %v1734_v56 = vld [vmem:[%s4078_s12] sm:$0xf]  ;;  %v1905_v59 = vld [vmem:[#allocation10 + $0x70] sm:$0xff] }
 0x1c2   : > { %2542 = vmatprep.subr.msk.mxu1 %vm1759_vm7, %v1734_v56  ;;  %v1903_v62 = vld [vmem:[#allocation10 + $0x60] sm:$0xff] }
 0x1c3   : > { %2734 = vpow2.f32 %v2272_v63  ;;  %v1902_v63 = vld [vmem:[#allocation10 + $0x58] sm:$0xff] }
 0x1ce   : > { %v2733_v0 = vpop.eup %2732 }
 0x1cf   : > { %v1395_v1 = vadd.f32 1.0, %v2733_v0 }
 0x1d0   : > { %v2735_v3 = vpop.eup %2734 }
 0x1d1   : > { %2736 = vrcp.f32 %v1395_v1  ;;  %v1396_v10 = vadd.f32 1.0, %v2735_v3 }
 0x1d3   : > { %2738 = vrcp.f32 %v1396_v10 }
 0x1de   : > { %v2737_v13 = vpop.eup %2736 }
 0x1df   : > { %v1409_v15 = vmul.f32 %v2737_v13, %v1408_v11 }
 0x1e0   : > { %v2739_v17 = vpop.eup %2738 }
 0x1e1   : > { %v1410_v16 = vadd.f32 %v1409_v15, %v1195_v14  ;;  %v1412_v18 = vsub.f32 1.0, %v2739_v17  ;;  %v1414_v46 = vmul.f32 %v2739_v17, %v3844_v28  ;;  %v1540_v28 = vld [vmem:[%s4077_s11 + $0x38] sm:$0xff] }
 0x1e2   : > { %2514 = vmatprep.subr.mxu0 %v1540_v28 }
 0x1e3   : > { %2740 = vtanh.f32 %v1410_v16  ;;  %2515 = vmatpush3.msra.mxu0 %v1540_v28 }
 0x1e4   : > { %2516 = vmatprep.subr.mxu0 %v1539_v30 }
 0x1e5   : > { %2517 = vmatpush3.msra.mxu0 %v1539_v30 }
 0x1e6   : > { %2518 = vmatprep.subr.mxu0 %v1538_v31 }
 0x1e7   : > { %2519 = vmatpush3.msra.mxu0 %v1538_v31 }
 0x1e8   : > { %2520 = vmatprep.subr.mxu0 %v1537_v32 }
 0x1e9   : > { %2521 = vmatpush3.msra.mxu0 %v1537_v32 }
 0x1ea   : > { %2522 = vmatprep.subr.mxu0 %v1536_v35 }
 0x1eb   : > { %2523 = vmatpush3.msra.mxu0 %v1536_v35 }
 0x1ec   : > { %2524 = vmatprep.subr.mxu0 %v1535_v38 }
 0x1ed   : > { %2525 = vmatpush3.msra.mxu0 %v1535_v38 }
 0x1ee   : > { %2526 = vmatprep.subr.mxu0 %v1534_v36 }
 0x1ef   : > { %2527 = vmatpush3.msra.mxu0 %v1534_v36 }
 0x1f0   : > { %v2741_v19 = vpop.eup %2740  ;;  %2528 = vmatprep.subr.mxu0 %v1533_v39 }
 0x1f1   : > { %v1413_v20 = vmul.f32 %v2741_v19, %v1412_v18  ;;  %2529 = vmatpush3.msra.mxu0 %v1533_v39 }
 0x1f2   : > { %2591 = vmatprep.subr.mxu0 %v3011_v40 }
 0x1f3   : > { %v3898_v23 = vadd.f32 %v1414_v46, %v1413_v20 }
 0x1f5   : > { %2496 = vmatmul.mubr.f32.vlgmr.msra.gmra.mxu1 %v3898_v23 }
 0x1f6   : > { %2543 = vmatpush3.msk.msra.mxu1 %vm1759_vm7, %v1734_v56 }
 0x1f7   : > { %2556 = vmatprep.subr.mxu1 %v3011_v40 }
 0x2b5   : > { %v1505_v47 = vpop.f32.mrf.mxu1 }
 0x2b6   : > { %v1506_v54 = vadd.f32 %v2274_v42, %v1505_v47 }
 0x2b7   : > { %v2497_v57 = vpop.f32.mrf.mxu1 }
 0x2b8   : > { %v1518_v60 = vadd.f32 %v1510_v43, %v1506_v54  ;;  %v1517_v5 = vadd.f32 %v1509_v44, %v1506_v54  ;;  %v1519_v9 = vadd.f32 %v1511_v53, %v1506_v54  ;;  %v1520_v27 = vadd.f32 %v1512_v6, %v1506_v54 }
 0x2b9   : > { %v1521_v22 = vadd.f32 %v1513_v12, %v1506_v54  ;;  %v1522_v26 = vadd.f32 %v1514_v21, %v1506_v54  ;;  %v1523_v34 = vadd.f32 %v1515_v24, %v1506_v54  ;;  %v1524_v37 = vadd.f32 %v1516_v33, %v1506_v54 }
 0x2ba   : > { %2742 = vtanh.f32 %v1518_v60 }
 0x2bb   : > { %2744 = vtanh.f32 %v1517_v5 }
 0x2bc   : > { %2746 = vtanh.f32 %v1519_v9 }
 0x2bd   : > { %2748 = vtanh.f32 %v1520_v27 }
 0x2be   : > { %2750 = vtanh.f32 %v1521_v22 }
 0x2bf   : > { %2752 = vtanh.f32 %v1522_v26 }
 0x2c0   : > { %2754 = vtanh.f32 %v1523_v34 }
 0x2c1   : > { %2756 = vtanh.f32 %v1524_v37 }
 0x2c7   : > { %v2743_v41 = vpop.eup %2742 }
 0x2c8   : > { %v2745_v45 = vpop.eup %2744 }
 0x2c9   : > { %2530 = vmatprep.mubr.f32.mxu0 %v2745_v45  ;;  %v2747_v48 = vpop.eup %2746 }
 0x2ca   : > { %2531 = vmatmul.mubr.f32.vlgmr.msra.gmra.mxu0 %v2743_v41  ;;  %v2749_v49 = vpop.eup %2748 }
 0x2cb   : > { %2533 = vmatprep.mubr.f32.mxu0 %v2747_v48  ;;  %v2751_v50 = vpop.eup %2750  ;;  %2592 = vmatpush3.msra.mxu0 %v1906_v58 }
 0x2cc   : > { %v2753_v51 = vpop.eup %2752  ;;  %2593 = vmatprep.subr.mxu0 %v3011_v40 }
 0x2cd   : > { %v2755_v52 = vpop.eup %2754  ;;  %2594 = vmatpush3.msra.mxu0 %v1905_v59 }
 0x2ce   : > { %2534 = vmatmul.mubr.f32.gmra.mxu0 %v2749_v49  ;;  %v2757_v55 = vpop.eup %2756  ;;  %2595 = vmatprep.subr.mxu0 %v3011_v40 }
 0x2cf   : > { %2536 = vmatprep.mubr.f32.mxu0 %v2751_v50  ;;  %2596 = vmatpush3.msra.mxu0 %v1904_v61 }
 0x2d0   : > { %2597 = vmatprep.subr.mxu0 %v3011_v40 }
 0x2d1   : > { %2598 = vmatpush3.msra.mxu0 %v1903_v62 }
 0x2d2   : > { %2537 = vmatmul.mubr.f32.gmra.mxu0 %v2753_v51  ;;  %2599 = vmatprep.subr.mxu0 %v3011_v40 }
 0x2d3   : > { %2539 = vmatprep.mubr.f32.mxu0 %v2755_v52  ;;  %2600 = vmatpush3.msra.mxu0 %v1902_v63 }
 0x2d4   : > { %2601 = vmatprep.subr.mxu0 %v3011_v40 }
 0x2d6   : > { %2540 = vmatmul.mubr.f32.gmra.mxu0 %v2757_v55 }
 0x2d7   : > { %2623 = vmatprep.mubr.msk.f32.mxu0 %vm3012_vm11, %v3011_v40 }
 0x38a   : > { %v2532_v0 = vpop.f32.mrf.mxu0 }
 0x38b   : > { %v1656_v17 = vsel %vm1654_vm3, %v2532_v0, -inf }
 0x38c   : > { %v1615_v1 = vpop.f32.mrf.mxu0 }
 0x38d   : > { %v1655_v11 = vsel %vm1654_vm3, %v1615_v1, -inf }
 0x38e   : > { %v2535_v2 = vpop.f32.mrf.mxu0 }
 0x38f   : > { %v1658_v18 = vsel %vm1654_vm3, %v2535_v2, -inf }
 0x390   : > { %v1625_v3 = vpop.f32.mrf.mxu0 }
 0x391   : > { %v1657_v19 = vsel %vm1654_vm3, %v1625_v3, -inf }
 0x392   : > { %v2538_v4 = vpop.f32.mrf.mxu0 }
 0x393   : > { %v1661_v13 = vsel %vm1654_vm3, %v2538_v4, -inf }
 0x394   : > { %v1635_v7 = vpop.f32.mrf.mxu0  ;;  %v1662_v46 = vmax.f32 %v1656_v17, %v1661_v13  ;;  %v1922_v13 = vld [vmem:[#allocation12 + $0x78] sm:$0xff] }
 0x395   : > { %v1659_v8 = vsel %vm1654_vm3, %v1635_v7, -inf }
 0x396   : > { %v2541_v10 = vpop.f32.mrf.mxu0  ;;  %v1660_v15 = vmax.f32 %v1655_v11, %v1659_v8  ;;  %v1720_v8 = vld [vmem:[%s3973_s0 + $0x10] sm:$0xff] }
 0x397   : > { %v1665_v14 = vsel %vm1654_vm3, %v2541_v10, -inf }
 0x398   : > { %v1645_v16 = vpop.f32.mrf.mxu0  ;;  %v1666_v25 = vmax.f32 %v1658_v18, %v1665_v14  ;;  %v1667_v28 = vmax.f32 %v1660_v15, %v1662_v46  ;;  %v1921_v18 = vld [vmem:[#allocation12 + $0x70] sm:$0xff]  ;;  %v1920_v46 = vld [vmem:[#allocation12 + $0x68] sm:$0xff] }
 0x399   : > { %v1663_v20 = vsel %vm1654_vm3, %v1645_v16, -inf }
 0x39a   : > { %v1664_v29 = vmax.f32 %v1657_v19, %v1663_v20  ;;  %v1722_v19 = vld [vmem:[%s3973_s0 + $0x20] sm:$0xff] }
 0x39c   : > { %v1668_v30 = vmax.f32 %v1664_v29, %v1666_v25 }
 0x39e   : > { %v1669_v31 = vmax.f32 %v1667_v28, %v1668_v30  ;;  %v1723_v28 = vld [vmem:[%s3973_s0 + $0x28] sm:$0xff] }
 0x3a0   : > { %v1670_v32 = vsub.f32 %v1615_v1, %v1669_v31  ;;  %v1671_v35 = vsub.f32 %v2532_v0, %v1669_v31  ;;  %v1672_v38 = vsub.f32 %v1625_v3, %v1669_v31  ;;  %v1673_v36 = vsub.f32 %v2535_v2, %v1669_v31  ;;  %v1718_v1 = vld [vmem:[%s3973_s0] sm:$0xff]  ;;  %v1719_v2 = vld [vmem:[%s3973_s0 + $0x8] sm:$0xff] }
 0x3a1   : > { %v1674_v39 = vsub.f32 %v1635_v7, %v1669_v31  ;;  %v1675_v47 = vsub.f32 %v2538_v4, %v1669_v31  ;;  %v1676_v54 = vsub.f32 %v1645_v16, %v1669_v31  ;;  %v1677_v60 = vsub.f32 %v2541_v10, %v1669_v31  ;;  %v1721_v16 = vld [vmem:[%s3973_s0 + $0x18] sm:$0xff]  ;;  %v1919_v31 = vld [vmem:[#allocation12 + $0x60] sm:$0xff] }
 0x3a2   : > { %v1678_v42 = vmul.f32 1.442695, %v1670_v32  ;;  %v1680_v44 = vmul.f32 1.442695, %v1671_v35  ;;  %v1682_v43 = vmul.f32 1.442695, %v1672_v38 }
 0x3a3   : > { %v1684_v53 = vmul.f32 1.442695, %v1673_v36  ;;  %v1686_v57 = vmul.f32 1.442695, %v1674_v39  ;;  %v1688_v5 = vmul.f32 1.442695, %v1675_v47 }
 0x3a4   : > { %2758 = vpow2.f32 %v1678_v42  ;;  %v1690_v6 = vmul.f32 1.442695, %v1676_v54  ;;  %v1692_v9 = vmul.f32 1.442695, %v1677_v60  ;;  %v1724_v32 = vld [vmem:[%s3973_s0 + $0x30] sm:$0xff]  ;;  %v1918_v38 = vld [vmem:[#allocation12 + $0x58] sm:$0xff] }
 0x3a5   : > { %2760 = vpow2.f32 %v1680_v44  ;;  %v1725_v42 = vld [vmem:[%s3973_s0 + $0x38] sm:$0xff]  ;;  %v1917_v44 = vld [vmem:[#allocation12 + $0x50] sm:$0xff]  ;;  %v1916_v47 = vld [vmem:[#allocation12 + $0x48] sm:$0xff]  ;;  %s2927_s0 = sshll.u32 %s3013_s27, 4  ;;  %s2928_s0 = int_to_ptr.vmem [resolvable:$false] %s2927_s0 }
 0x3a6   : > { %2762 = vpow2.f32 %v1682_v43  ;;  %v1914_v54 = vld [vmem:[#allocation12 + $0x38] sm:$0xff]  ;;  %v1912_v60 = vld [vmem:[#allocation12 + $0x28] sm:$0xff]  ;;  %s2929_s25 = scalar_lea.vmem %s2928_s0, 256  ;;  %p2930_p7 = scmp.lt.s32.totalorder %s2088_s13, %s2928_s0 }
 0x3a7   : > { %2764 = vpow2.f32 %v1684_v53  ;;  %v1915_v53 = vld [vmem:[#allocation12 + $0x40] sm:$0xff]  ;;  %p2931_p13 = scmp.lt.s32.totalorder %s2929_s25, %s2923_s7 }
 0x3a8   : > { %2766 = vpow2.f32 %v1686_v57  ;;  %v1913_v57 = vld [vmem:[#allocation12 + $0x30] sm:$0xff] }
 0x3a9   : > { %2768 = vpow2.f32 %v1688_v5  ;;  %v1911_v5 = vld [vmem:[#allocation12 + $0x20] sm:$0xff]  ;;  %p2932_p6 = por %p2931_p13, %p2930_p7 }
 0x3aa   : > { %2770 = vpow2.f32 %v1690_v6  ;;  %v1910_v6 = vld [vmem:[#allocation12 + $0x18] sm:$0xff] }
 0x3ab   : > { %2772 = vpow2.f32 %v1692_v9  ;;  %v1909_v9 = vld [vmem:[#allocation12 + $0x10] sm:$0xff]  ;;  %p2933_p9 = pnand %p2932_p6, %p2926_p4 }
 0x3b1   : > { %v2759_v12 = vpop.eup %2758 }
 0x3b2   : > { %v2761_v27 = vpop.eup %2760  ;;  %v1694_v21 = vsel %vm1654_vm3, %v2759_v12, 0.0 }
 0x3b3   : > { %v2763_v22 = vpop.eup %2762  ;;  %v1695_v24 = vsel %vm1654_vm3, %v2761_v27, 0.0 }
 0x3b4   : > { %v2765_v26 = vpop.eup %2764  ;;  %v1696_v33 = vadd.f32 %v1695_v24, %v1694_v21  ;;  %v1697_v34 = vsel %vm1654_vm3, %v2763_v22, 0.0  ;;  %v1901_v21 = vld [vmem:[#allocation10 + $0x50] sm:$0xff]  ;;  %v1899_v24 = vld [vmem:[#allocation10 + $0x40] sm:$0xff] }
 0x3b5   : > { %v2767_v37 = vpop.eup %2766  ;;  %v1699_v45 = vsel %vm1654_vm3, %v2765_v26, 0.0  ;;  %2602 = vmatpush3.msra.mxu0 %v1901_v21 }
 0x3b6   : > { %v1698_v41 = vadd.f32 %v1697_v34, %v1696_v33  ;;  %v2769_v48 = vpop.eup %2768  ;;  %v1701_v50 = vsel %vm1654_vm3, %v2767_v37, 0.0  ;;  %2603 = vmatprep.subr.mxu0 %v3011_v40  ;;  %v1897_v33 = vld [vmem:[#allocation10 + $0x30] sm:$0xff]  ;;  %v1895_v34 = vld [vmem:[#allocation10 + $0x20] sm:$0xff] }
 0x3b7   : > { %v2771_v51 = vpop.eup %2770  ;;  %v1703_v55 = vsel %vm1654_vm3, %v2769_v48, 0.0 }
 0x3b8   : > { %v1700_v49 = vadd.f32 %v1699_v45, %v1698_v41  ;;  %v2773_v56 = vpop.eup %2772  ;;  %v1705_v59 = vsel %vm1654_vm3, %v2771_v51, 0.0  ;;  %v1893_v41 = vld [vmem:[#allocation10 + $0x10] sm:$0xff]  ;;  %v1892_v45 = vld [vmem:[#allocation10 + $0x8] sm:$0xff] }
 0x3b9   : > { %v1707_v62 = vsel %vm1654_vm3, %v2773_v56, 0.0 }
 0x3ba   : > { %v1702_v52 = vadd.f32 %v1701_v50, %v1700_v49  ;;  %v1868_v50 = vld [vmem:[%s658_s17] sm:$0xff] }
 0x3bc   : > { %v1704_v58 = vadd.f32 %v1703_v55, %v1702_v52 }
 0x3be   : > { %v1706_v61 = vadd.f32 %v1705_v59, %v1704_v58  ;;  %v1870_v58 = vld [vmem:[%s658_s17 + $0x10] sm:$0xff] }
 0x3c0   : > { %v1708_v63 = vadd.f32 %v1707_v62, %v1706_v61  ;;  %v1871_v61 = vld [vmem:[%s658_s17 + $0x18] sm:$0xff] }
 0x3c2   : > { %2774 = vrcp.f32 %v1708_v63 }
 0x3cf   : > { %v2775_v0 = vpop.eup %2774 }
 0x3d0   : > { %v1710_v3 = vmul.f32 %v2775_v0, %v2759_v12  ;;  %v1711_v4 = vmul.f32 %v2775_v0, %v2761_v27  ;;  %v1712_v7 = vmul.f32 %v2775_v0, %v2763_v22  ;;  %v1713_v14 = vmul.f32 %v2775_v0, %v2765_v26  ;;  %v1908_v12 = vld [vmem:[#allocation12 + $0x8] sm:$0xff]  ;;  %v1907_v27 = vld [vmem:[#allocation12] sm:$0xff]  ;;  %v1898_v26 = vld [vmem:[#allocation10 + $0x38] sm:$0xff] }
 0x3d1   : > { %v1714_v17 = vmul.f32 %v2775_v0, %v2767_v37  ;;  %v1715_v25 = vmul.f32 %v2775_v0, %v2769_v48  ;;  %v1716_v30 = vmul.f32 %v2775_v0, %v2771_v51  ;;  %v1717_v36 = vmul.f32 %v2775_v0, %v2773_v56  ;;  %v1900_v22 = vld [vmem:[#allocation10 + $0x48] sm:$0xff]  ;;  %v1894_v37 = vld [vmem:[#allocation10 + $0x18] sm:$0xff]  ;;  %v1891_v48 = vld [vmem:[#allocation10] sm:$0xff] }
 0x3d2   : > { %v1726_v10 = vmul.f32 %v1718_v1, %v1710_v3  ;;  %v1727_v11 = vmul.f32 %v1719_v2, %v1711_v4  ;;  %v1728_v15 = vmul.f32 %v1720_v8, %v1712_v7  ;;  %v1729_v20 = vmul.f32 %v1721_v16, %v1713_v14  ;;  %2604 = vmatpush3.msra.mxu0 %v1900_v22  ;;  %v1869_v51 = vld [vmem:[%s658_s17 + $0x8] sm:$0xff]  ;;  %v1872_v2 = vld [vmem:[%s658_s17 + $0x20] sm:$0xff]  ;;  %v1875_v16 = vld [vmem:[%s658_s17 + $0x38] sm:$0xff] }
 0x3d3   : > { %v1730_v29 = vmul.f32 %v1722_v19, %v1714_v17  ;;  %v1731_v35 = vmul.f32 %v1723_v28, %v1715_v25  ;;  %v1732_v39 = vmul.f32 %v1724_v32, %v1716_v30  ;;  %v1733_v43 = vmul.f32 %v1725_v42, %v1717_v36  ;;  %2605 = vmatprep.subr.mxu0 %v3011_v40  ;;  %v1873_v4 = vld [vmem:[%s658_s17 + $0x28] sm:$0xff] }
 0x3d4   : > { %2544 = vmatprep.mubr.msk.f32.mxu1 %vm1654_vm3, %v1726_v10  ;;  %2606 = vmatpush3.msra.mxu0 %v1899_v24 }
 0x3d5   : > { %2545 = vmatmul.mubr.msk.f32.vlgmr.msra.gmra.mxu1 %vm1654_vm3, %v1727_v11  ;;  %2607 = vmatprep.subr.mxu0 %v3011_v40 }
 0x3d6   : > { %2557 = vmatpush3.msra.mxu1 %v1922_v13  ;;  %2547 = vmatprep.mubr.msk.f32.mxu1 %vm1654_vm3, %v1728_v15  ;;  %v1874_v13 = vld [vmem:[%s658_s17 + $0x30] sm:$0xff] }
 0x3d7   : > { %2558 = vmatprep.subr.mxu1 %v3011_v40  ;;  %2608 = vmatpush3.msra.mxu0 %v1898_v26 }
 0x3d8   : > { %2559 = vmatpush3.msra.mxu1 %v1921_v18  ;;  %2609 = vmatprep.subr.mxu0 %v3011_v40 }
 0x3d9   : > { %2560 = vmatprep.subr.mxu1 %v3011_v40  ;;  %2548 = vmatmul.mubr.msk.f32.gmra.mxu1 %vm1654_vm3, %v1729_v20 }
 0x3da   : > { %2561 = vmatpush3.msra.mxu1 %v1920_v46  ;;  %2550 = vmatprep.mubr.msk.f32.mxu1 %vm1654_vm3, %v1730_v29 }
 0x3db   : > { %2562 = vmatprep.subr.mxu1 %v3011_v40  ;;  %2610 = vmatpush3.msra.mxu0 %v1897_v33 }
 0x3dc   : > { %2563 = vmatpush3.msra.mxu1 %v1919_v31  ;;  %2611 = vmatprep.subr.mxu0 %v3011_v40  ;;  %v2284_v31 = vld [vmem:[%s4187_s28] ss:$0 sm:$0xff] }
 0x3dd   : > { %2564 = vmatprep.subr.mxu1 %v3011_v40  ;;  %2551 = vmatmul.mubr.msk.f32.gmra.mxu1 %vm1654_vm3, %v1731_v35 }
 0x3de   : > { %2565 = vmatpush3.msra.mxu1 %v1918_v38  ;;  %2553 = vmatprep.mubr.msk.f32.mxu1 %vm1654_vm3, %v1732_v39 }
 0x3df   : > { %2566 = vmatprep.subr.mxu1 %v3011_v40 }
 0x3e0   : > { %2567 = vmatpush3.msra.mxu1 %v1917_v44 }
 0x3e1   : > { %2568 = vmatprep.subr.mxu1 %v3011_v40  ;;  %2554 = vmatmul.mubr.msk.f32.gmra.mxu1 %vm1654_vm3, %v1733_v43 }
 0x3e2   : > { %2569 = vmatpush3.msra.mxu1 %v1916_v47  ;;  %2588 = vmatprep.mubr.msk.f32.mxu1 %vm3012_vm11, %v3011_v40 }
 0x3e3   : > { %2570 = vmatprep.subr.mxu1 %v3011_v40 }
 0x3e4   : > { %2571 = vmatpush3.msra.mxu1 %v1915_v53 }
 0x3e5   : > { %2572 = vmatprep.subr.mxu1 %v3011_v40 }
 0x3e6   : > { %2573 = vmatpush3.msra.mxu1 %v1914_v54 }
 0x3e7   : > { %2574 = vmatprep.subr.mxu1 %v3011_v40 }
 0x3e8   : > { %2575 = vmatpush3.msra.mxu1 %v1913_v57 }
 0x3e9   : > { %2576 = vmatprep.subr.mxu1 %v3011_v40 }
 0x3ea   : > { %2577 = vmatpush3.msra.mxu1 %v1912_v60 }
 0x3eb   : > { %2578 = vmatprep.subr.mxu1 %v3011_v40 }
 0x3ec   : > { %2579 = vmatpush3.msra.mxu1 %v1911_v5 }
 0x3ed   : > { %2580 = vmatprep.subr.mxu1 %v3011_v40 }
 0x3ee   : > { %2581 = vmatpush3.msra.mxu1 %v1910_v6 }
 0x3ef   : > { %2582 = vmatprep.subr.mxu1 %v3011_v40 }
 0x3f0   : > { %2583 = vmatpush3.msra.mxu1 %v1909_v9 }
 0x3f1   : > { %2584 = vmatprep.subr.mxu1 %v3011_v40 }
 0x3f2   : > { %2585 = vmatpush3.msra.mxu1 %v1908_v12 }
 0x3f3   : > { %2586 = vmatprep.subr.mxu1 %v3011_v40 }
 0x3f4   : > { %2587 = vmatpush3.msra.mxu1 %v1907_v27 }
 0x3f5   : > { %2589 = vmatmul.mubr.f32.vlgmr.msra.gmra.mxu1 %v3898_v23  ;;  %v1896_v23 = vld [vmem:[#allocation10 + $0x28] sm:$0xff] }
 0x3f6   : > { %2612 = vmatpush3.msra.mxu0 %v1896_v23 }
 0x3f7   : > { %2613 = vmatprep.subr.mxu0 %v3011_v40 }
 0x3f8   : > { %2614 = vmatpush3.msra.mxu0 %v1895_v34 }
 0x3f9   : > { %2615 = vmatprep.subr.mxu0 %v3011_v40 }
 0x3fa   : > { %2616 = vmatpush3.msra.mxu0 %v1894_v37 }
 0x3fb   : > { %2617 = vmatprep.subr.mxu0 %v3011_v40 }
 0x3fc   : > { %2618 = vmatpush3.msra.mxu0 %v1893_v41 }
 0x3fd   : > { %2619 = vmatprep.subr.mxu0 %v3011_v40 }
 0x3fe   : > { %2620 = vmatpush3.msra.mxu0 %v1892_v45 }
 0x3ff   : > { %2621 = vmatprep.subr.mxu0 %v3011_v40 }
 0x400   : > { %2622 = vmatpush3.msra.mxu0 %v1891_v48 }
 0x495   : > { %v2546_v49 = vpop.f32.mrf.mxu1 }
 0x496   : > { %v1877_v59 = vmul.f32 %v2546_v49, %v1869_v51 }
 0x497   : > { %v1829_v52 = vpop.f32.mrf.mxu1 }
 0x498   : > { %v1876_v55 = vmul.f32 %v1868_v50, %v1829_v52 }
 0x499   : > { %v2549_v56 = vpop.f32.mrf.mxu1 }
 0x49a   : > { %v1884_v63 = vadd.f32 %v1877_v59, %v1876_v55  ;;  %v1879_v40 = vmul.f32 %v2549_v56, %v1871_v61 }
 0x49b   : > { %v1839_v62 = vpop.f32.mrf.mxu1 }
 0x49c   : > { %v1878_v0 = vmul.f32 %v1870_v58, %v1839_v62 }
 0x49d   : > { %v2552_v1 = vpop.f32.mrf.mxu1 }
 0x49e   : > { %v1885_v3 = vadd.f32 %v1884_v63, %v1878_v0  ;;  %v1881_v14 = vmul.f32 %v2552_v1, %v1873_v4 }
 0x49f   : > { %v1849_v7 = vpop.f32.mrf.mxu1 }
 0x4a0   : > { %v1880_v8 = vmul.f32 %v1872_v2, %v1849_v7  ;;  %v1886_v10 = vadd.f32 %v1885_v3, %v1879_v40 }
 0x4a1   : > { %v2555_v11 = vpop.f32.mrf.mxu1 }
 0x4a2   : > { %v1887_v15 = vadd.f32 %v1886_v10, %v1880_v8  ;;  %v1883_v20 = vmul.f32 %v2555_v11, %v1875_v16 }
 0x4a3   : > { %v1859_v17 = vpop.f32.mrf.mxu1 }
 0x4a4   : > { %v1882_v18 = vmul.f32 %v1874_v13, %v1859_v17  ;;  %v1888_v19 = vadd.f32 %v1887_v15, %v1881_v14 }
 0x4a6   : > { %v1889_v46 = vadd.f32 %v1888_v19, %v1882_v18 }
 0x4a8   : > { %v1890_v25 = vadd.f32 %v1889_v46, %v1883_v20 }
 0x4aa   : > { %2624 = vmatmul.mubr.f32.vlgmr.msra.gmra.mxu0 %v1890_v25 }
 0x4b5   : > { %v1989_v29 = vpop.f32.mrf.mxu1 }
 0x4b7   : > { %v2590_v28 = vpop.f32.mrf.mxu1 }
 0x56a   : > { %v2059_v30 = vpop.f32.mrf.mxu0 }
 0x56b   : > { %v2060_v32 = vadd.f32 %v2059_v30, %v1989_v29 }
 0x56c   : > { %v2625_v35 = vpop.f32.mrf.mxu0 }
 0x56d   : > { %v2070_v38 = vadd.f32 %v2284_v31, %v2060_v32 }
 0x56f   : > { %2776 = vtanh.f32 %v2070_v38 }
 0x57c   : > { %v2777_v36 = vpop.eup %2776 }
 0x57d   : > { %2072 = vst [vmem:[%s644_s14] sm:$0xff] %v2777_v36 }
 0x57e   : > { %2936 = shalt.err (!%p2933_p9)
}
 0x57f   : > { %s2937_s9 = scalar_lea.hbm %s4031_s5, 128  ;;  %s2941_s16 = scalar_lea.hbm %s4189_s26, 256 }
 0x580   : > { %p2938_p8 = scmp.ne.s32.totalorder %s4031_s5, %s2937_s9  ;;  %p2942_p10 = scmp.lt.s32.totalorder %s4031_s5, %s4189_s26 }
 0x581   : > { %p2943_p2 = scmp.lt.s32.totalorder %s2941_s16, %s2937_s9 }
 0x582   : > { %p2939_p11 = pnand %p2938_p8, %p3137_p5 }
 0x583   : > { %p2944_p0 = por %p2943_p2, %p2942_p10 }
 0x584   : > { %p2940_p12 = pneg %p2939_p11 }
 0x586   : > { %p2945_p1 = pnand %p2944_p0, %p2940_p12 }
 0x588   : > { %2948 = shalt.err (!%p2945_p1)
}
 0x589   : > { %2650 = dma.vmem_to_hbm [thread:$0]  (%p3137_p5), %s2088_s13, 128, %s4031_s5, %s2074_s15  }
 0x58a PF: > { %s4190_s21 = sld [smem:[#allocation21_spill]] }
 0x58b   : > { %s4191_s19 = sld [smem:[#allocation19_spill]] }
 0x58c   : > { %s4192_s20 = sld [smem:[#allocation25_spill]] }
 0x590   : > { %p2687_p3 = scmp.ge.s32.totalorder %s4190_s21, 2 }
 0x591   : > { %s2099_s14 = sand.u32 1, %s4191_s19  }
 0x592   : > { %p4193_p4 = scmp.ne.s32.totalorder %s4192_s20, 0  ;;  %s2100_s29 = scalar_lea.sflag [#allocation4], %s2099_s14 }
 0x594   : > { %p2672_p7 = pnand %p2687_p3, %p4193_p4 }
 0x596   : > { %p2673_p13 = pneg %p2672_p7 }
 0x598   : > { %2982 = dma.done.wait (%p2673_p13), %s2100_s29, 128  }
 0x599   : > { %2984 = vsyncadd (%p2673_p13), %s2100_s29, 4294967168  ;;  %s4194_s24 = sld [smem:[#allocation22_spill]]  ;;  %s4197_s21 = smov %s2991_s22 }
 0x59a   : > { %s4195_s18 = sld [smem:[#allocation20_spill]] }
 0x59b   : > { %s4196_s23 = sld [smem:[#allocation23_spill]] }
 0x59f   : > { %p30_p6 = scmp.ge.s32.totalorder %s4194_s24, 4  }
 0x5a0   : > { %s4198_s22 = smov %s4195_s18 }
 0x5a1   :  { %32 = sbr.rel (!%p30_p6) target bundleno = 16 (0x10), region = 154 }
 0x5a6   :  { %2105 = vsyncpa [#allocation3], 1 }
 0x5a7   :  { %2107 = vsyncpa [#allocation3 + $0x1], 1 }
 0x5a8   :  { %2108 = vsyncpa [#allocation8], 1 }
 0x5a9   :  { %2109 = vsyncpa [#allocation11], 1 }
 0x5aa   :  { %2110 = vsyncpa [#allocation4], 1 }
 0x5ab   :  { %2112 = vsyncpa [#allocation4 + $0x1], 1 }
 0x5ac   :  { %2113 = vsyncpa [#allocation5], 1 }
 0x5ad   :  { %2115 = vsyncpa [#allocation5 + $0x1], 1 }

</bundles_post_ra>
